<compile_context>
chip_gen: v7x
topology: tpu7x:2x2x1
jax: 0.10.0
libtpu: 0.0.40
codegen_flags: <defaults>
</compile_context>

<pallas_src>
from functools import partial

import jax
import jax.numpy as jnp
from jax import lax
from jax.experimental import pallas as pl
from jax.experimental.pallas import tpu as pltpu


# --------------------------- fused kernel ---------------------------
def _make_fused_kernel(Ho, Wo, Cin, Cmid, Cout, mxu_dtype):
    M = Ho * Wo
    C4 = 4 * Cin

    def kernel(x_ref, hpos_ref, wpos_ref, w1_ref, sh1_ref, w2_ref, b2_ref,
               w3_ref, sh2_ref, o_ref):
        # flat (h, w) indices of every output pixel -> zero-padding halo keep-masks, (1, M) f32
        h_idx = hpos_ref[...]
        w_idx = wpos_ref[...]
        keep_r0 = jnp.where(h_idx == 0, 0.0, 1.0)        # kill sources with h-1 < 0
        keep_c0 = jnp.where(w_idx == 0, 0.0, 1.0)        # kill sources with w-1 < 0
        keep_rL = jnp.where(h_idx == Ho - 1, 0.0, 1.0)   # kill sources with h+1 >= Ho
        keep_cL = jnp.where(w_idx == Wo - 1, 0.0, 1.0)   # kill sources with w+1 >= Wo

        # ---- stage 1: conv1 3x3/s2/p1 (+bias, BN folded) + ReLU, as ONE K=4*C4 matmul ----
        # x_ref[0]: (C4, M) space-to-depth input, channel-major, spatial flattened.
        x = x_ref[0].astype(jnp.float32)
        # tap (dh, dw) at flat position m holds s2d[h+dh-1, w+dw-1]  (zero in the top/left halo)
        t10 = pltpu.roll(x, 1, 1) * keep_c0                       # (dh=1, dw=0): s2d[h, w-1]
        t01 = pltpu.roll(x, Wo, 1) * keep_r0                      # (dh=0, dw=1): s2d[h-1, w]
        t00 = pltpu.roll(x, Wo + 1, 1) * (keep_r0 * keep_c0)      # (dh=0, dw=0): s2d[h-1, w-1]
        taps = jnp.concatenate([t00, t01, t10, x], axis=0).astype(mxu_dtype)  # (4*C4, M)
        y1 = jnp.dot(w1_ref[...], taps, preferred_element_type=jnp.float32)
        y1 = jnp.maximum(y1 + sh1_ref[...], 0.0)                  # (Cmid, M) f32, stays in VMEM

        # ---- stage 2: ConvDPUnit 1x1 pointwise conv + bias ----
        y2 = jnp.dot(w2_ref[...], y1.astype(mxu_dtype),
                     preferred_element_type=jnp.float32) + b2_ref[...]        # (Cout, M) f32

        # ---- stage 3: depthwise 3x3/s1/p1 (+bias, BN folded) + ReLU, channel-major ----
        w3 = w3_ref[...]                                          # (Cout, 9), BN folded
        row_keep = (keep_r0, None, keep_rL)
        col_keep = (keep_c0, None, keep_cL)
        acc = y2 * w3[:, 4:5]                                     # centre tap -> no zeros init
        for kh in range(3):                                       # static 3x3 taps, unrolled
            for kw in range(3):
                if kh == 1 and kw == 1:
                    continue
                src_off = (kh - 1) * Wo + (kw - 1)                # source = m + src_off
                tap = pltpu.roll(y2, (-src_off) % M, 1)           # XLU lane rotate
                keep = row_keep[kh]
                if col_keep[kw] is not None:
                    keep = col_keep[kw] if keep is None else keep * col_keep[kw]
                if keep is not None:
                    tap = tap * keep
                k = kh * 3 + kw
                acc = acc + tap * w3[:, k:k + 1]
        o_ref[0] = jnp.maximum(acc + sh2_ref[...], 0.0).astype(o_ref.dtype)

    return kernel


# ------------------------------ wrapper ------------------------------
@partial(jax.jit, static_argnames=("mxu_dtype",))
def conv_head_forward(x_nchw, params, mxu_dtype=jnp.bfloat16):
    (w1, b1, s1, t1, w2, b2, w3, b3, s2, t2) = params

    N, Cin, H, W = x_nchw.shape
    assert H % 2 == 0 and W % 2 == 0, "space-to-depth path assumes even spatial dims"
    Cmid = w1.shape[-1]
    Cout = w2.shape[-1]
    Ho, Wo = H // 2, W // 2
    M = Ho * Wo
    C4 = 4 * Cin

    x = x_nchw.astype(jnp.float32)
    # NCHW -> channel-major space-to-depth with flattened spatial (single XLA transpose):
    #   xs[n, (pr*2+pc)*Cin + ci, h*Wo + w] = x[n, ci, 2h+pr, 2w+pc]
    xs = (x.reshape(N, Cin, Ho, 2, Wo, 2)
           .transpose(0, 3, 5, 1, 2, 4)
           .reshape(N, C4, M)).astype(mxu_dtype)

    # flat (h, w) index maps used in-kernel to build the zero-padding halo masks
    hpos = jnp.repeat(jnp.arange(Ho, dtype=jnp.int32), Wo).reshape(1, M)
    wpos = jnp.tile(jnp.arange(Wo, dtype=jnp.int32), Ho).reshape(1, M)

    # ---- fold BN1 into conv1 and scatter the 3x3 taps into the 2x2-over-s2d kernel ----
    # mapping k -> (tap offset d, s2d phase p): 0 -> (0,1), 1 -> (1,0), 2 -> (1,1)
    phase = ((0, 1), (1, 0), (1, 1))
    w1s = jnp.zeros((2, 2, 2, 2, Cin, Cmid), jnp.float32)   # (dh, dw, pr, pc, ci, co)
    for kh in range(3):
        dh, pr = phase[kh]
        for kw in range(3):
            dw, pc = phase[kw]
            w1s = w1s.at[dh, dw, pr, pc].set(w1[kh, kw])
    # tap-matrix row index: (dh*2+dw)*C4 + (pr*2+pc)*Cin + ci  (matches the kernel concat order)
    w1cm = (w1s * s1).reshape(4 * C4, Cmid).T.astype(mxu_dtype)   # (Cmid, 4*C4), BN folded
    sh1 = (b1 * s1 + t1).reshape(Cmid, 1)                         # conv1 bias + BN shift (f32)
    w2cm = w2.T.astype(mxu_dtype)                                 # (Cout, Cmid)
    b2c = b2.reshape(Cout, 1)
    w3cm = (w3 * s2).reshape(9, Cout).T                           # (Cout, 9), BN folded (f32)
    sh2 = (b3 * s2 + t2).reshape(Cout, 1)

    kernel = _make_fused_kernel(Ho, Wo, Cin, Cmid, Cout, mxu_dtype)

    y = pl.pallas_call(
        kernel,
        out_shape=jax.ShapeDtypeStruct((N, Cout, M), jnp.float32),
        grid=(N,),
        in_specs=[
            pl.BlockSpec((1, C4, M), lambda n: (n, 0, 0)),     # s2d input (per image)
            pl.BlockSpec((1, M), lambda n: (0, 0)),            # flat h index (resident)
            pl.BlockSpec((1, M), lambda n: (0, 0)),            # flat w index (resident)
            pl.BlockSpec((Cmid, 4 * C4), lambda n: (0, 0)),    # conv1 weights (BN folded)
            pl.BlockSpec((Cmid, 1), lambda n: (0, 0)),         # conv1 bias + BN shift
            pl.BlockSpec((Cout, Cmid), lambda n: (0, 0)),      # pointwise weights
            pl.BlockSpec((Cout, 1), lambda n: (0, 0)),         # pointwise bias
            pl.BlockSpec((Cout, 9), lambda n: (0, 0)),         # depthwise weights (BN folded)
            pl.BlockSpec((Cout, 1), lambda n: (0, 0)),         # depthwise bias + BN shift
        ],
        out_specs=pl.BlockSpec((1, Cout, M), lambda n: (n, 0, 0)),
        compiler_params=pltpu.CompilerParams(
            dimension_semantics=("parallel",),
            vmem_limit_bytes=32 * 1024 * 1024,
        ),
    )(xs, hpos, wpos, w1cm, sh1, w2cm, b2c, w3cm, sh2)

    # channel-major flat plane -> NCHW is a pure metadata reshape: no transpose, no extra HBM pass
    return y.reshape(N, Cout, Ho, Wo)


# ----------------------- parameters / reference -----------------------
def init_params(key, in_ch, mid_ch, out_ch, eps=1e-5):
    ks = jax.random.split(key, 14)
    # conv1: 3x3, stride 2, pad 1 (stored HWIO)
    w1 = 0.1 * jax.random.normal(ks[0], (3, 3, in_ch, mid_ch), jnp.float32)
    b1 = 0.05 * jax.random.normal(ks[1], (mid_ch,), jnp.float32)
    # bn1 (eval mode, folded)
    g1 = 1.0 + 0.1 * jax.random.normal(ks[2], (mid_ch,), jnp.float32)
    beta1 = 0.05 * jax.random.normal(ks[3], (mid_ch,), jnp.float32)
    rm1 = 0.1 * jax.random.normal(ks[4], (mid_ch,), jnp.float32)
    rv1 = 1.0 + jax.nn.softplus(jax.random.normal(ks[5], (mid_ch,), jnp.float32))
    s1 = g1 / jnp.sqrt(rv1 + eps)
    t1 = beta1 - rm1 * s1
    # ConvDPUnit.conv1: 1x1 pointwise
    w2 = 0.1 * jax.random.normal(ks[6], (mid_ch, out_ch), jnp.float32)
    b2 = 0.05 * jax.random.normal(ks[7], (out_ch,), jnp.float32)
    # ConvDPUnit.conv2: depthwise 3x3 (groups=out_ch)
    w3 = 0.1 * jax.random.normal(ks[8], (3, 3, out_ch), jnp.float32)
    b3 = 0.05 * jax.random.normal(ks[9], (out_ch,), jnp.float32)
    # ConvDPUnit.bn (eval mode, folded)
    g2 = 1.0 + 0.1 * jax.random.normal(ks[10], (out_ch,), jnp.float32)
    beta2 = 0.05 * jax.random.normal(ks[11], (out_ch,), jnp.float32)
    rm2 = 0.1 * jax.random.normal(ks[12], (out_ch,), jnp.float32)
    rv2 = 1.0 + jax.nn.softplus(jax.random.normal(ks[13], (out_ch,), jnp.float32))
    s2 = g2 / jnp.sqrt(rv2 + eps)
    t2 = beta2 - rm2 * s2
    return (w1, b1, s1, t1, w2, b2, w3, b3, s2, t2)


def reference_forward(x_nchw, params, mxu_dtype=jnp.float32):
    """Pure-XLA reference. With mxu_dtype=bfloat16 it mirrors the kernel's bf16-operand /
    f32-accumulate matmul precision; with float32 it is the plain f32 eval-mode semantics."""
    (w1, b1, s1, t1, w2, b2, w3, b3, s2, t2) = params
    cout = w2.shape[-1]
    xb = jnp.transpose(x_nchw, (0, 2, 3, 1)).astype(jnp.float32)
    y = lax.conv_general_dilated(
        xb.astype(mxu_dtype), (w1 * s1).astype(mxu_dtype), (2, 2), ((1, 1), (1, 1)),
        dimension_numbers=('NHWC', 'HWIO', 'NHWC'),
        preferred_element_type=jnp.float32)
    y = jnp.maximum(y + (b1 * s1 + t1), 0.0)
    y = jnp.einsum('nhwc,co->nhwo', y.astype(mxu_dtype), w2.astype(mxu_dtype),
                   preferred_element_type=jnp.float32) + b2
    y = lax.conv_general_dilated(
        y, (w3 * s2).reshape(3, 3, 1, cout), (1, 1), ((1, 1), (1, 1)),
        dimension_numbers=('NHWC', 'HWIO', 'NHWC'), feature_group_count=cout,
        preferred_element_type=jnp.float32)
    y = jnp.maximum(y + (b3 * s2 + t2), 0.0)
    return jnp.transpose(y, (0, 3, 1, 2))


if __name__ == "__main__":
    in_ch, mid_ch, out_ch = 4, 16, 32
    key = jax.random.PRNGKey(0)
    kx, kp = jax.random.split(key)
    # 32x32 input -> Ho*Wo = 256 (a multiple of 128), so the flat lane dimension is tile-aligned.
    x = jax.random.normal(kx, (2, in_ch, 32, 32), jnp.float32)   # NCHW, like PyTorch
    params = init_params(kp, in_ch, mid_ch, out_ch)

    out = jax.block_until_ready(conv_head_forward(x, params))
    assert out.shape == (2, out_ch, 16, 16), out.shape

    # matched-precision reference (bf16 MXU operands, f32 accumulation) -> tight tolerance
    ref_bf16 = jax.block_until_ready(reference_forward(x, params, mxu_dtype=jnp.bfloat16))
    err_m = float(jnp.max(jnp.abs(out - ref_bf16)))
    assert jnp.allclose(out, ref_bf16, rtol=2e-3, atol=2e-3), f"matched max abs err {err_m}"

    # full-f32 reference (original module semantics) -> bf16-appropriate tolerance
    ref_f32 = jax.block_until_ready(reference_forward(x, params, mxu_dtype=jnp.float32))
    err_f = float(jnp.max(jnp.abs(out - ref_f32)))
    assert jnp.allclose(out, ref_f32, rtol=5e-2, atol=5e-2), f"f32 max abs err {err_f}"

    print("KERNEL_OK")
</pallas_src>

<mosaic_0001>
module attributes {stable_mosaic.version = 11 : i64} {
  func.func @kernel(%arg0: i32, %arg1: memref<1x16x256xbf16, #tpu.memory_space<vmem>>, %arg2: memref<1x256xi32, #tpu.memory_space<vmem>>, %arg3: memref<1x256xi32, #tpu.memory_space<vmem>>, %arg4: memref<16x64xbf16, #tpu.memory_space<vmem>>, %arg5: memref<16x1xf32, #tpu.memory_space<vmem>>, %arg6: memref<32x16xbf16, #tpu.memory_space<vmem>>, %arg7: memref<32x1xf32, #tpu.memory_space<vmem>>, %arg8: memref<32x9xf32, #tpu.memory_space<vmem>>, %arg9: memref<32x1xf32, #tpu.memory_space<vmem>>, %arg10: memref<1x32x256xf32, #tpu.memory_space<vmem>>) attributes {dimension_semantics = [#tpu.dimension_semantics<parallel>], iteration_bounds = array<i64: 2>, scalar_prefetch = 0 : i64, scratch_operands = 0 : i64, tpu.core_type = #tpu.core_type<tc>, window_params = [{transform_indices = @transform_0, window_bounds = array<i64: 1, 16, 256>}, {pipeline_mode = #tpu.pipeline_mode<synchronous>, transform_indices = @transform_1, window_bounds = array<i64: 1, 256>}, {pipeline_mode = #tpu.pipeline_mode<synchronous>, transform_indices = @transform_2, window_bounds = array<i64: 1, 256>}, {pipeline_mode = #tpu.pipeline_mode<synchronous>, transform_indices = @transform_3, window_bounds = array<i64: 16, 64>}, {pipeline_mode = #tpu.pipeline_mode<synchronous>, transform_indices = @transform_4, window_bounds = array<i64: 16, 1>}, {pipeline_mode = #tpu.pipeline_mode<synchronous>, transform_indices = @transform_5, window_bounds = array<i64: 32, 16>}, {pipeline_mode = #tpu.pipeline_mode<synchronous>, transform_indices = @transform_6, window_bounds = array<i64: 32, 1>}, {pipeline_mode = #tpu.pipeline_mode<synchronous>, transform_indices = @transform_7, window_bounds = array<i64: 32, 9>}, {pipeline_mode = #tpu.pipeline_mode<synchronous>, transform_indices = @transform_8, window_bounds = array<i64: 32, 1>}, {transform_indices = @transform_9, window_bounds = array<i64: 1, 32, 256>}]} {
    %c0 = arith.constant 0 : index
    %c0_0 = arith.constant 0 : index
    %0 = vector.load %arg2[%c0, %c0_0] : memref<1x256xi32, #tpu.memory_space<vmem>>, vector<1x256xi32>
    %c0_1 = arith.constant 0 : index
    %c0_2 = arith.constant 0 : index
    %1 = vector.load %arg3[%c0_1, %c0_2] : memref<1x256xi32, #tpu.memory_space<vmem>>, vector<1x256xi32>
    %c0_i32 = arith.constant 0 : i32
    %2 = vector.broadcast %c0_i32 : i32 to vector<1x256xi32>
    %3 = arith.cmpi eq, %0, %2 : vector<1x256xi32>
    %cst = arith.constant 0.000000e+00 : f32
    %cst_3 = arith.constant 1.000000e+00 : f32
    %4 = vector.broadcast %cst : f32 to vector<1x256xf32>
    %5 = vector.broadcast %cst_3 : f32 to vector<1x256xf32>
    %6 = arith.select %3, %4, %5 : vector<1x256xi1>, vector<1x256xf32>
    %c0_i32_4 = arith.constant 0 : i32
    %7 = vector.broadcast %c0_i32_4 : i32 to vector<1x256xi32>
    %8 = arith.cmpi eq, %1, %7 : vector<1x256xi32>
    %cst_5 = arith.constant 0.000000e+00 : f32
    %cst_6 = arith.constant 1.000000e+00 : f32
    %9 = vector.broadcast %cst_5 : f32 to vector<1x256xf32>
    %10 = vector.broadcast %cst_6 : f32 to vector<1x256xf32>
    %11 = arith.select %8, %9, %10 : vector<1x256xi1>, vector<1x256xf32>
    %c15_i32 = arith.constant 15 : i32
    %12 = vector.broadcast %c15_i32 : i32 to vector<1x256xi32>
    %13 = arith.cmpi eq, %0, %12 : vector<1x256xi32>
    %cst_7 = arith.constant 0.000000e+00 : f32
    %cst_8 = arith.constant 1.000000e+00 : f32
    %14 = vector.broadcast %cst_7 : f32 to vector<1x256xf32>
    %15 = vector.broadcast %cst_8 : f32 to vector<1x256xf32>
    %16 = arith.select %13, %14, %15 : vector<1x256xi1>, vector<1x256xf32>
    %c15_i32_9 = arith.constant 15 : i32
    %17 = vector.broadcast %c15_i32_9 : i32 to vector<1x256xi32>
    %18 = arith.cmpi eq, %1, %17 : vector<1x256xi32>
    %cst_10 = arith.constant 0.000000e+00 : f32
    %cst_11 = arith.constant 1.000000e+00 : f32
    %19 = vector.broadcast %cst_10 : f32 to vector<1x256xf32>
    %20 = vector.broadcast %cst_11 : f32 to vector<1x256xf32>
    %21 = arith.select %18, %19, %20 : vector<1x256xi1>, vector<1x256xf32>
    %c0_12 = arith.constant 0 : index
    %c0_13 = arith.constant 0 : index
    %c0_14 = arith.constant 0 : index
    %22 = vector.load %arg1[%c0_12, %c0_13, %c0_14] : memref<1x16x256xbf16, #tpu.memory_space<vmem>>, vector<1x16x256xbf16>
    %23 = vector.shape_cast %22 : vector<1x16x256xbf16> to vector<16x256xbf16>
    %24 = arith.extf %23 : vector<16x256xbf16> to vector<16x256xf32>
    %c1_i32 = arith.constant 1 : i32
    %25 = tpu.dynamic_rotate %24 by %c1_i32 dim 1 : vector<16x256xf32>, i32 -> vector<16x256xf32>
    %26 = vector.broadcast %11 : vector<1x256xf32> to vector<16x256xf32>
    %27 = arith.mulf %25, %26 : vector<16x256xf32>
    %c16_i32 = arith.constant 16 : i32
    %28 = tpu.dynamic_rotate %24 by %c16_i32 dim 1 : vector<16x256xf32>, i32 -> vector<16x256xf32>
    %29 = vector.broadcast %6 : vector<1x256xf32> to vector<16x256xf32>
    %30 = arith.mulf %28, %29 : vector<16x256xf32>
    %c17_i32 = arith.constant 17 : i32
    %31 = tpu.dynamic_rotate %24 by %c17_i32 dim 1 : vector<16x256xf32>, i32 -> vector<16x256xf32>
    %32 = arith.mulf %6, %11 : vector<1x256xf32>
    %33 = vector.broadcast %32 : vector<1x256xf32> to vector<16x256xf32>
    %34 = arith.mulf %31, %33 : vector<16x256xf32>
    %35 = tpu.concatenate %34, %30, %27, %24 in 0 : vector<16x256xf32>, vector<16x256xf32>, vector<16x256xf32>, vector<16x256xf32> -> vector<64x256xf32>
    %36 = arith.truncf %35 : vector<64x256xf32> to vector<64x256xbf16>
    %c0_15 = arith.constant 0 : index
    %c0_16 = arith.constant 0 : index
    %37 = vector.load %arg4[%c0_15, %c0_16] : memref<16x64xbf16, #tpu.memory_space<vmem>>, vector<16x64xbf16>
    %cst_17 = arith.constant dense<0.000000e+00> : vector<16x256xf32>
    %38 = tpu.matmul %37, %36, %cst_17 {dimension_numbers = #tpu.dot_dimension_numbers<[1], [0], [0], [1], [0, 0, 1, 1], [], []>} : vector<16x64xbf16>, vector<64x256xbf16>, vector<16x256xf32> -> vector<16x256xf32>
    %c0_18 = arith.constant 0 : index
    %c0_19 = arith.constant 0 : index
    %39 = vector.load %arg5[%c0_18, %c0_19] : memref<16x1xf32, #tpu.memory_space<vmem>>, vector<16x1xf32>
    %40 = vector.broadcast %39 : vector<16x1xf32> to vector<16x256xf32>
    %41 = arith.addf %38, %40 : vector<16x256xf32>
    %cst_20 = arith.constant 0.000000e+00 : f32
    %42 = vector.broadcast %cst_20 : f32 to vector<16x256xf32>
    %43 = arith.maximumf %41, %42 : vector<16x256xf32>
    %c0_21 = arith.constant 0 : index
    %c0_22 = arith.constant 0 : index
    %44 = vector.load %arg6[%c0_21, %c0_22] : memref<32x16xbf16, #tpu.memory_space<vmem>>, vector<32x16xbf16>
    %45 = arith.truncf %43 : vector<16x256xf32> to vector<16x256xbf16>
    %cst_23 = arith.constant dense<0.000000e+00> : vector<32x256xf32>
    %46 = tpu.matmul %44, %45, %cst_23 {dimension_numbers = #tpu.dot_dimension_numbers<[1], [0], [0], [1], [0, 0, 1, 1], [], []>} : vector<32x16xbf16>, vector<16x256xbf16>, vector<32x256xf32> -> vector<32x256xf32>
    %c0_24 = arith.constant 0 : index
    %c0_25 = arith.constant 0 : index
    %47 = vector.load %arg7[%c0_24, %c0_25] : memref<32x1xf32, #tpu.memory_space<vmem>>, vector<32x1xf32>
    %48 = vector.broadcast %47 : vector<32x1xf32> to vector<32x256xf32>
    %49 = arith.addf %46, %48 : vector<32x256xf32>
    %c0_26 = arith.constant 0 : index
    %c0_27 = arith.constant 0 : index
    %50 = vector.load %arg8[%c0_26, %c0_27] : memref<32x9xf32, #tpu.memory_space<vmem>>, vector<32x9xf32>
    %51 = vector.extract_strided_slice %50 {offsets = [0, 4], sizes = [32, 1], strides = [1, 1]} : vector<32x9xf32> to vector<32x1xf32>
    %52 = vector.broadcast %51 : vector<32x1xf32> to vector<32x256xf32>
    %53 = arith.mulf %49, %52 : vector<32x256xf32>
    %c17_i32_28 = arith.constant 17 : i32
    %54 = tpu.dynamic_rotate %49 by %c17_i32_28 dim 1 : vector<32x256xf32>, i32 -> vector<32x256xf32>
    %55 = arith.mulf %6, %11 : vector<1x256xf32>
    %56 = vector.broadcast %55 : vector<1x256xf32> to vector<32x256xf32>
    %57 = arith.mulf %54, %56 : vector<32x256xf32>
    %58 = vector.extract_strided_slice %50 {offsets = [0, 0], sizes = [32, 1], strides = [1, 1]} : vector<32x9xf32> to vector<32x1xf32>
    %59 = vector.broadcast %58 : vector<32x1xf32> to vector<32x256xf32>
    %60 = arith.mulf %57, %59 : vector<32x256xf32>
    %61 = arith.addf %53, %60 : vector<32x256xf32>
    %c16_i32_29 = arith.constant 16 : i32
    %62 = tpu.dynamic_rotate %49 by %c16_i32_29 dim 1 : vector<32x256xf32>, i32 -> vector<32x256xf32>
    %63 = vector.broadcast %6 : vector<1x256xf32> to vector<32x256xf32>
    %64 = arith.mulf %62, %63 : vector<32x256xf32>
    %65 = vector.extract_strided_slice %50 {offsets = [0, 1], sizes = [32, 1], strides = [1, 1]} : vector<32x9xf32> to vector<32x1xf32>
    %66 = vector.broadcast %65 : vector<32x1xf32> to vector<32x256xf32>
    %67 = arith.mulf %64, %66 : vector<32x256xf32>
    %68 = arith.addf %61, %67 : vector<32x256xf32>
    %c15_i32_30 = arith.constant 15 : i32
    %69 = tpu.dynamic_rotate %49 by %c15_i32_30 dim 1 : vector<32x256xf32>, i32 -> vector<32x256xf32>
    %70 = arith.mulf %6, %21 : vector<1x256xf32>
    %71 = vector.broadcast %70 : vector<1x256xf32> to vector<32x256xf32>
    %72 = arith.mulf %69, %71 : vector<32x256xf32>
    %73 = vector.extract_strided_slice %50 {offsets = [0, 2], sizes = [32, 1], strides = [1, 1]} : vector<32x9xf32> to vector<32x1xf32>
    %74 = vector.broadcast %73 : vector<32x1xf32> to vector<32x256xf32>
    %75 = arith.mulf %72, %74 : vector<32x256xf32>
    %76 = arith.addf %68, %75 : vector<32x256xf32>
    %c1_i32_31 = arith.constant 1 : i32
    %77 = tpu.dynamic_rotate %49 by %c1_i32_31 dim 1 : vector<32x256xf32>, i32 -> vector<32x256xf32>
    %78 = vector.broadcast %11 : vector<1x256xf32> to vector<32x256xf32>
    %79 = arith.mulf %77, %78 : vector<32x256xf32>
    %80 = vector.extract_strided_slice %50 {offsets = [0, 3], sizes = [32, 1], strides = [1, 1]} : vector<32x9xf32> to vector<32x1xf32>
    %81 = vector.broadcast %80 : vector<32x1xf32> to vector<32x256xf32>
    %82 = arith.mulf %79, %81 : vector<32x256xf32>
    %83 = arith.addf %76, %82 : vector<32x256xf32>
    %c255_i32 = arith.constant 255 : i32
    %84 = tpu.dynamic_rotate %49 by %c255_i32 dim 1 : vector<32x256xf32>, i32 -> vector<32x256xf32>
    %85 = vector.broadcast %21 : vector<1x256xf32> to vector<32x256xf32>
    %86 = arith.mulf %84, %85 : vector<32x256xf32>
    %87 = vector.extract_strided_slice %50 {offsets = [0, 5], sizes = [32, 1], strides = [1, 1]} : vector<32x9xf32> to vector<32x1xf32>
    %88 = vector.broadcast %87 : vector<32x1xf32> to vector<32x256xf32>
    %89 = arith.mulf %86, %88 : vector<32x256xf32>
    %90 = arith.addf %83, %89 : vector<32x256xf32>
    %c241_i32 = arith.constant 241 : i32
    %91 = tpu.dynamic_rotate %49 by %c241_i32 dim 1 : vector<32x256xf32>, i32 -> vector<32x256xf32>
    %92 = arith.mulf %16, %11 : vector<1x256xf32>
    %93 = vector.broadcast %92 : vector<1x256xf32> to vector<32x256xf32>
    %94 = arith.mulf %91, %93 : vector<32x256xf32>
    %95 = vector.extract_strided_slice %50 {offsets = [0, 6], sizes = [32, 1], strides = [1, 1]} : vector<32x9xf32> to vector<32x1xf32>
    %96 = vector.broadcast %95 : vector<32x1xf32> to vector<32x256xf32>
    %97 = arith.mulf %94, %96 : vector<32x256xf32>
    %98 = arith.addf %90, %97 : vector<32x256xf32>
    %c240_i32 = arith.constant 240 : i32
    %99 = tpu.dynamic_rotate %49 by %c240_i32 dim 1 : vector<32x256xf32>, i32 -> vector<32x256xf32>
    %100 = vector.broadcast %16 : vector<1x256xf32> to vector<32x256xf32>
    %101 = arith.mulf %99, %100 : vector<32x256xf32>
    %102 = vector.extract_strided_slice %50 {offsets = [0, 7], sizes = [32, 1], strides = [1, 1]} : vector<32x9xf32> to vector<32x1xf32>
    %103 = vector.broadcast %102 : vector<32x1xf32> to vector<32x256xf32>
    %104 = arith.mulf %101, %103 : vector<32x256xf32>
    %105 = arith.addf %98, %104 : vector<32x256xf32>
    %c239_i32 = arith.constant 239 : i32
    %106 = tpu.dynamic_rotate %49 by %c239_i32 dim 1 : vector<32x256xf32>, i32 -> vector<32x256xf32>
    %107 = arith.mulf %16, %21 : vector<1x256xf32>
    %108 = vector.broadcast %107 : vector<1x256xf32> to vector<32x256xf32>
    %109 = arith.mulf %106, %108 : vector<32x256xf32>
    %110 = vector.extract_strided_slice %50 {offsets = [0, 8], sizes = [32, 1], strides = [1, 1]} : vector<32x9xf32> to vector<32x1xf32>
    %111 = vector.broadcast %110 : vector<32x1xf32> to vector<32x256xf32>
    %112 = arith.mulf %109, %111 : vector<32x256xf32>
    %113 = arith.addf %105, %112 : vector<32x256xf32>
    %c0_32 = arith.constant 0 : index
    %c0_33 = arith.constant 0 : index
    %114 = vector.load %arg9[%c0_32, %c0_33] : memref<32x1xf32, #tpu.memory_space<vmem>>, vector<32x1xf32>
    %115 = vector.broadcast %114 : vector<32x1xf32> to vector<32x256xf32>
    %116 = arith.addf %113, %115 : vector<32x256xf32>
    %cst_34 = arith.constant 0.000000e+00 : f32
    %117 = vector.broadcast %cst_34 : f32 to vector<32x256xf32>
    %118 = arith.maximumf %116, %117 : vector<32x256xf32>
    %c0_35 = arith.constant 0 : index
    %c0_36 = arith.constant 0 : index
    %c0_37 = arith.constant 0 : index
    %119 = vector.load %arg10[%c0_35, %c0_36, %c0_37] : memref<1x32x256xf32, #tpu.memory_space<vmem>>, vector<1x32x256xf32>
    %120 = vector.shape_cast %119 : vector<1x32x256xf32> to vector<32x256xf32>
    %121 = vector.shape_cast %118 : vector<32x256xf32> to vector<1x32x256xf32>
    tpu.vector_store %arg10[%c0_35, %c0_36, %c0_37], %121 {strides = array<i32>} : memref<1x32x256xf32, #tpu.memory_space<vmem>>, vector<1x32x256xf32>,
    return
  }
  func.func @transform_0(%arg0: i32) -> (i32, i32, i32) {
    %c0_i32 = arith.constant 0 : i32
    %c0_i32_0 = arith.constant 0 : i32
    %c0_i32_1 = arith.constant 0 : i32
    return %arg0, %c0_i32, %c0_i32_0 : i32, i32, i32
  }
  func.func @transform_1(%arg0: i32) -> (i32, i32) {
    %c0_i32 = arith.constant 0 : i32
    %c0_i32_0 = arith.constant 0 : i32
    %c0_i32_1 = arith.constant 0 : i32
    return %c0_i32, %c0_i32_0 : i32, i32
  }
  func.func @transform_2(%arg0: i32) -> (i32, i32) {
    %c0_i32 = arith.constant 0 : i32
    %c0_i32_0 = arith.constant 0 : i32
    %c0_i32_1 = arith.constant 0 : i32
    return %c0_i32, %c0_i32_0 : i32, i32
  }
  func.func @transform_3(%arg0: i32) -> (i32, i32) {
    %c0_i32 = arith.constant 0 : i32
    %c0_i32_0 = arith.constant 0 : i32
    %c0_i32_1 = arith.constant 0 : i32
    return %c0_i32, %c0_i32_0 : i32, i32
  }
  func.func @transform_4(%arg0: i32) -> (i32, i32) {
    %c0_i32 = arith.constant 0 : i32
    %c0_i32_0 = arith.constant 0 : i32
    %c0_i32_1 = arith.constant 0 : i32
    return %c0_i32, %c0_i32_0 : i32, i32
  }
  func.func @transform_5(%arg0: i32) -> (i32, i32) {
    %c0_i32 = arith.constant 0 : i32
    %c0_i32_0 = arith.constant 0 : i32
    %c0_i32_1 = arith.constant 0 : i32
    return %c0_i32, %c0_i32_0 : i32, i32
  }
  func.func @transform_6(%arg0: i32) -> (i32, i32) {
    %c0_i32 = arith.constant 0 : i32
    %c0_i32_0 = arith.constant 0 : i32
    %c0_i32_1 = arith.constant 0 : i32
    return %c0_i32, %c0_i32_0 : i32, i32
  }
  func.func @transform_7(%arg0: i32) -> (i32, i32) {
    %c0_i32 = arith.constant 0 : i32
    %c0_i32_0 = arith.constant 0 : i32
    %c0_i32_1 = arith.constant 0 : i32
    return %c0_i32, %c0_i32_0 : i32, i32
  }
  func.func @transform_8(%arg0: i32) -> (i32, i32) {
    %c0_i32 = arith.constant 0 : i32
    %c0_i32_0 = arith.constant 0 : i32
    %c0_i32_1 = arith.constant 0 : i32
    return %c0_i32, %c0_i32_0 : i32, i32
  }
  func.func @transform_9(%arg0: i32) -> (i32, i32, i32) {
    %c0_i32 = arith.constant 0 : i32
    %c0_i32_0 = arith.constant 0 : i32
    %c0_i32_1 = arith.constant 0 : i32
    return %arg0, %c0_i32, %c0_i32_0 : i32, i32, i32
  }
}

</mosaic_0001>

<bundles_post_ra>
// kernel: conv_head_forward.1
= control target key start
LH: loop header
LB: loop body
LE: loop exit
PB: predicated region body
PF: predicated region fallthrough
CT: control target
= control target key end

     0   :  { %s1504_s30 = smov 0   ;;  %s2336_s0 = inlined_call_operand.vmem [shape: bf16[2,16,256], index: 0, kind: input, shape index: {}]   ;;  %s2337_s1 = inlined_call_operand.vmem [shape: s32[1,256], index: 1, kind: input, shape index: {}]   ;;  %s2338_s2 = inlined_call_operand.vmem [shape: s32[1,256], index: 2, kind: input, shape index: {}]   ;;  %s2339_s3 = inlined_call_operand.vmem [shape: bf16[16,64], index: 3, kind: input, shape index: {}]   ;;  %s2340_s4 = inlined_call_operand.vmem [shape: f32[16,1], index: 4, kind: input, shape index: {}]   ;;  %s2341_s5 = inlined_call_operand.vmem [shape: bf16[32,16], index: 5, kind: input, shape index: {}]   ;;  %s2342_s6 = inlined_call_operand.vmem [shape: f32[32,1], index: 6, kind: input, shape index: {}]   ;;  %s2343_s7 = inlined_call_operand.vmem [shape: f32[32,9], index: 7, kind: input, shape index: {}]   ;;  %s2344_s8 = inlined_call_operand.vmem [shape: f32[32,1], index: 8, kind: input, shape index: {}]   ;;  %s2345_s9 = inlined_call_operand.vmem [shape: f32[2,32,256], index: 9, kind: output, shape index: {}]  }
   0x1 LB: > { %s1325_s10 = sadd.s32 4294967295, %s1434_s30   ;;  %p1329_p0 = scmp.ge.s32.totalorder %s1434_s30, 1  ;;  %s1434_s30 = sphi %s1504_s30, %s19_s30  }
   0x2   : > { %p287_p1 = scmp.lt.s32.totalorder %s1434_s30, 3 }
   0x4   : > { %p288_p2 = pnand %p1329_p0, %p287_p1 }
   0x6   : > { %291 = sbr.rel (%p288_p2) target bundleno = 866 (0x362), region = 56 }
   0xd   : > { %p323_p3 = scmp.lt.s32.totalorder %s1325_s10, 1  ;;  %s1436_s15 = smov 16   ;;  %v1439_v10 = vmov 0   ;;  %v448_v11 = vld [vmem:[%s2340_s4 + $0x8] sm:$0xff]  ;;  %v447_v12 = vld [vmem:[%s2340_s4] sm:$0xff]  ;;  %v523_v14 = vld [vmem:[%s2342_s6 + $0x10] sm:$0xff]  ;;  %v358_v17 = vlaneseq }
   0xe   : > { %s1437_s16 = smov 17   ;;  %s1438_s17 = smov 1   ;;  %500 = vmatprep.mubr.bf16.mxu0 %v1439_v10  ;;  %1403 = vset.pattern.permute.xlu1 %v1439_v10  ;;  %v521_v13 = vld [vmem:[%s2342_s6] sm:$0xff]  ;;  %v2346_v19 = vmov 1.0   ;;  %vm464_vm5 = vcmask 523264   ;;  %vm555_vm6 = vcmask 130048  }
   0xf   : > { %s2422_s10 = smov (!%p323_p3, %s1325_s10), 1  ;;  %1402 = vset.pattern.permute.xlu0 %v1439_v10  ;;  %594 = vmatprep.mubr.bf16.mxu1 %v1439_v10  ;;  %v1555_v15 = vld [vmem:[%s2337_s1] sm:$0x3]  ;;  %v367_v18 = vshrl.u32 %v358_v17, 7  ;;  %v1570_v22 = vand.u32 127, %v358_v17  ;;  %s1449_s20 = smov 15  }
  0x10   : > { %s1344_s11 = sshll.u32 %s2422_s10, 4  ;;  %v1560_v16 = vld [vmem:[%s2338_s2] sm:$0x3]  ;;  %vm336_vm0 = vcmp.eq.s32.totalorder %v1555_v15, 0  ;;  %s1450_s21 = smov 113   ;;  %vm340_vm7 = vcmp.eq.s32.totalorder %v1555_v15, 15 }
  0x11   : > { %s327_s14 = scalar_lea.vmem %s2336_s0, %s1344_s11  ;;  %vm338_vm1 = vcmp.eq.s32.totalorder %v1560_v16, 0  ;;  %v1565_v20 = vsel %vm336_vm0, 0.0, %v2346_v19  ;;  %v1572_v23 = vsub.s32 1, %v367_v18  ;;  %v1576_v25 = vsub.s32 0, %v367_v18  ;;  %s1451_s22 = smov 127  }
  0x12   : > { %v1518_v0 = vld [vmem:[%s327_s14] sm:$0xff]  ;;  %v1520_v1 = vld [vmem:[%s327_s14 + $0x8] sm:$0xff]  ;;  %v1568_v21 = vsel %vm338_vm1, 0.0, %v2346_v19  ;;  %vm416_vm2 = vcmp.lt.s32.totalorder %v1570_v22, 17  ;;  %vm388_vm3 = vcmp.lt.s32.totalorder %v1570_v22, 16  ;;  %vm360_vm4 = vcmp.lt.s32.totalorder %v1570_v22, 1 }
  0x13   : > { %v346_v2 = vunpack.c.l.bf16 %v1518_v0  ;;  %v348_v3 = vunpack.c.l.bf16 %v1520_v1  ;;  %v347_v4 = vunpack.c.h.bf16 %v1518_v0  ;;  %v349_v5 = vunpack.c.h.bf16 %v1520_v1  ;;  %s1452_s23 = smov 112   ;;  %s1453_s24 = smov 111  }
  0x14   : > { %v1335_v8 = vcombine.high %v1518_v0, %v1520_v1  ;;  %v1334_v9 = vcombine.low %v1518_v0, %v1520_v1  ;;  %v421_v24 = vmul.f32 %v1568_v21, %v1565_v20  ;;  %v1588_v30 = vrot.slane %v1565_v20, %v1572_v23  ;;  %v1660_v0 = vld [vmem:[%s2343_s7 + $0x10] sm:$0xff] }
  0x15   : > { %v1382_v6 = vpack.i.bf16 %v348_v3, %v346_v2  ;;  %v1387_v7 = vpack.i.bf16 %v349_v5, %v347_v4  ;;  %v1592_v33 = vrot.slane %v1565_v20, %v1576_v25  ;;  %v1597_v34 = vrot.slane %v1568_v21, %v1572_v23 }
  0x16   : > { %v1580_v28 = vrot.slane %v421_v24, %v1572_v23  ;;  %v1583_v29 = vrot.slane %v421_v24, %v1576_v25  ;;  %v1601_v35 = vrot.slane %v1568_v21, %v1576_v25  ;;  %v1442_v1 = vmov 1  }
  0x17   : > { %1383 = vrot.lane.b32.xlu1 %v1382_v6, %s1436_s15  ;;  %1373 = vrot.lane.b32.xlu0 %v1382_v6, %s1437_s16  ;;  %vm342_vm8 = vcmp.eq.s32.totalorder %v1560_v16, 15  ;;  %v2396_v15 = vmov 1.0   ;;  %vm1008_vm9 = vcmp.lt.s32.totalorder %v1570_v22, 113  ;;  %vm791_vm10 = vcmp.lt.s32.totalorder %v1570_v22, 15 }
  0x18   : > { %v343_v16 = vsel %vm342_vm8, 0.0, %v2396_v15  ;;  %vm932_vm11 = vcmp.lt.s32.totalorder %v1570_v22, 127  ;;  %vm1085_vm12 = vcmp.lt.s32.totalorder %v1570_v22, 112  ;;  %vm1161_vm13 = vcmp.lt.s32.totalorder %v1570_v22, 111 }
  0x1b   : > { %1388 = vrot.lane.b32.xlu1 %v1387_v7, %s1436_s15  ;;  %1378 = vrot.lane.b32.xlu0 %v1387_v7, %s1437_s16 }
  0x1f   : > { %1398 = vrot.lane.b32.xlu1 %v1387_v7, %s1438_s17  ;;  %1393 = vrot.lane.b32.xlu0 %v1382_v6, %s1438_s17 }
  0x23   : > { %456 = vperm.xlu1 %1403, %v448_v11   ;;  %451 = vperm.xlu0 %1402, %v447_v12  }
  0x27   : > { %527 = vperm.xlu1 %1403, %v521_v13  }
  0x2b   : > { %537 = vperm.xlu1 %1403, %v523_v14  }
  0x89   : > { %v1384_v26 = vpop.permute.xlu1 %1383  ;;  %v1374_v27 = vpop.permute.xlu0 %1373 }
  0x8a   : > { %v1376_v36 = vunpack.i.h.bf16 %v1374_v27  ;;  %v1375_v37 = vunpack.i.l.bf16 %v1374_v27  ;;  %v1386_v40 = vunpack.i.h.bf16 %v1384_v26  ;;  %v1385_v41 = vunpack.i.l.bf16 %v1384_v26 }
  0x8d   : > { %v1389_v31 = vpop.permute.xlu1 %1388  ;;  %v1379_v32 = vpop.permute.xlu0 %1378 }
  0x8e   : > { %v1381_v38 = vunpack.i.h.bf16 %v1379_v32  ;;  %v1380_v39 = vunpack.i.l.bf16 %v1379_v32  ;;  %v1391_v42 = vunpack.i.h.bf16 %v1389_v31  ;;  %v1390_v43 = vunpack.i.l.bf16 %v1389_v31  ;;  %v1425_v32 = vld [vmem:[%s2339_s3] sm:$0xff]  }
  0x90   : > { %v417_v44 = vsel %vm416_vm2, %v1375_v37, %v1380_v39  ;;  %v418_v45 = vsel %vm416_vm2, %v1376_v36, %v1381_v38  ;;  %v419_v46 = vsel %vm416_vm2, %v1380_v39, %v1375_v37  ;;  %v420_v47 = vsel %vm416_vm2, %v1381_v38, %v1376_v36  ;;  %v1651_v36 = vld [vmem:[%s2343_s7 + $0x8] sm:$0xff] }
  0x91   : > { %v1399_v48 = vpop.permute.xlu1 %1398  ;;  %v1394_v49 = vpop.permute.xlu0 %1393  ;;  %v434_v50 = vmul.f32 %v1580_v28, %v417_v44  ;;  %v436_v51 = vmul.f32 %v1580_v28, %v418_v45  ;;  %v433_v52 = vmul.f32 %v1583_v29, %v419_v46  ;;  %v435_v53 = vmul.f32 %v1583_v29, %v420_v47  ;;  %v522_v44 = vld [vmem:[%s2342_s6 + $0x8] sm:$0xff]  ;;  %v524_v45 = vld [vmem:[%s2342_s6 + $0x18] sm:$0xff]  ;;  %v1222_v46 = vld [vmem:[%s2344_s8] sm:$0xff] }
  0x92   : > { %v1401_v54 = vunpack.i.h.bf16 %v1399_v48  ;;  %v1400_v55 = vunpack.i.l.bf16 %v1399_v48  ;;  %v1396_v56 = vunpack.i.h.bf16 %v1394_v49  ;;  %v1395_v57 = vunpack.i.l.bf16 %v1394_v49  ;;  %v1223_v47 = vld [vmem:[%s2344_s8 + $0x8] sm:$0xff] }
  0x93   : > { %v438_v58 = vpack.c.bf16 %v436_v51, %v434_v50  ;;  %v437_v59 = vpack.c.bf16 %v435_v53, %v433_v52  ;;  %v389_v60 = vsel %vm388_vm3, %v1385_v41, %v1390_v43  ;;  %v390_v61 = vsel %vm388_vm3, %v1386_v40, %v1391_v42 }
  0x94   : > { %v405_v62 = vmul.f32 %v1588_v30, %v389_v60  ;;  %v407_v63 = vmul.f32 %v1588_v30, %v390_v61  ;;  %v391_v2 = vsel %vm388_vm3, %v1390_v43, %v1385_v41  ;;  %v392_v3 = vsel %vm388_vm3, %v1391_v42, %v1386_v40 }
  0x95   : > { %468 = vmatprep.subr.bf16.mxu0 %v438_v58  ;;  %v404_v4 = vmul.f32 %v1592_v33, %v391_v2  ;;  %v406_v5 = vmul.f32 %v1592_v33, %v392_v3  ;;  %v361_v6 = vsel %vm360_vm4, %v1395_v57, %v1400_v55  ;;  %v362_v7 = vsel %vm360_vm4, %v1396_v56, %v1401_v54  ;;  %v1426_v2 = vld [vmem:[%s2341_s5] sm:$0xff]   ;;  %v1427_v3 = vld [vmem:[%s2341_s5 + $0x8] sm:$0xff]  }
  0x96   : > { %469 = vmatpush1.bf16.msra.mxu0 %v437_v59  ;;  %v440_v11 = vpack.c.bf16 %v407_v63, %v405_v62  ;;  %v377_v12 = vmul.f32 %v1597_v34, %v361_v6  ;;  %v379_v13 = vmul.f32 %v1597_v34, %v362_v7  ;;  %v363_v14 = vsel %vm360_vm4, %v1400_v55, %v1395_v57 }
  0x97   : > { %v364_v17 = vsel %vm360_vm4, %v1401_v54, %v1396_v56  ;;  %v376_v18 = vmul.f32 %v1601_v35, %v363_v14  ;;  %v439_v24 = vpack.c.bf16 %v406_v5, %v404_v4  ;;  %v1441_v37 = vmov 4  }
  0x98   : > { %470 = vmatprep.subr.bf16.mxu0 %v440_v11  ;;  %v442_v26 = vpack.c.bf16 %v379_v13, %v377_v12  ;;  %v378_v27 = vmul.f32 %v1601_v35, %v364_v17  ;;  %1405 = vset.pattern.permute.xlu0 %v1441_v37  ;;  %v1443_v38 = vmov 2   ;;  %v1444_v39 = vmov 3  }
  0x99   : > { %1404 = vset.pattern.permute.xlu1 %v1441_v37  ;;  %626 = vperm.xlu0 %1405, %v1651_v36   ;;  %v1445_v40 = vmov 5   ;;  %v1446_v41 = vmov 6   ;;  %v1447_v42 = vmov 7   ;;  %v1448_v43 = vmov 8  }
  0x9a   : > { %471 = vmatpush1.bf16.msra.mxu0 %v439_v24  ;;  %v441_v31 = vpack.c.bf16 %v378_v27, %v376_v18 }
  0x9b   : > { %472 = vmatprep.subr.bf16.mxu0 %v442_v26 }
  0x9d   : > { %1408 = vset.pattern.permute.xlu0 %v1442_v1 }
  0x9e   : > { %473 = vmatpush1.bf16.msra.mxu0 %v441_v31  ;;  %748 = vperm.xlu0 %1408, %v1651_v36  }
  0x9f   : > { %474 = vmatprep.subr.bf16.mxu0 %v1335_v8  ;;  %v615_v8 = vld [vmem:[%s2343_s7] sm:$0xff] }
  0xa0   : > { %621 = vperm.xlu1 %1404, %v615_v8  }
  0xa2   : > { %475 = vmatpush1.bf16.msra.mxu0 %v1334_v9  ;;  %v618_v9 = vld [vmem:[%s2343_s7 + $0x18] sm:$0xff]  ;;  %1409 = vset.pattern.permute.xlu0 %v1443_v38  ;;  %v452_v48 = vpop.permute.xlu0 %451  ;;  %v457_v52 = vpop.permute.xlu1 %456 }
  0xa3   : > { %821 = vperm.xlu0 %1409, %v615_v8  }
  0xa4   : > { %631 = vperm.xlu1 %1404, %v1660_v0  }
  0xa5   : > { %1337 = vmatmul.mubr.msk.bf16.vlgmr.msra.gmra.mrb[0].mxu0 %vm464_vm5, %v1425_v32 }
  0xa6   : > { %v528_v7 = vpop.permute.xlu1 %527 }
  0xa7   : > { %833 = vperm.xlu0 %1409, %v618_v9  }
  0xa8   : > { %636 = vperm.xlu1 %1404, %v618_v9  }
  0xaa   : > { %v1712_v12 = vpop.permute.xlu1 %537 }
  0xab   : > { %1412 = vset.pattern.permute.xlu0 %v1444_v39 }
  0xac   : > { %1406 = vset.pattern.permute.xlu1 %v1439_v10  ;;  %889 = vperm.xlu0 %1412, %v1651_v36  }
  0xad   : > { %684 = vperm.xlu1 %1406, %v1651_v36  }
  0xb0   : > { %1413 = vset.pattern.permute.xlu0 %v1445_v40 }
  0xb1   : > { %688 = vperm.xlu1 %1406, %v1660_v0   ;;  %961 = vperm.xlu0 %1413, %v615_v8  }
  0xb5   : > { %1407 = vset.pattern.permute.xlu1 %v1442_v1  ;;  %973 = vperm.xlu0 %1413, %v618_v9  }
  0xb6   : > { %744 = vperm.xlu1 %1407, %v615_v8  }
  0xb9   : > { %1416 = vset.pattern.permute.xlu0 %v1446_v41 }
  0xba   : > { %752 = vperm.xlu1 %1407, %v1660_v0   ;;  %1042 = vperm.xlu0 %1416, %v1651_v36  }
  0xbe   : > { %756 = vperm.xlu1 %1407, %v618_v9   ;;  %1418 = vset.pattern.permute.xlu0 %v1447_v42 }
  0xbf   : > { %1118 = vperm.xlu0 %1418, %v1651_v36  }
  0xc2   : > { %1410 = vset.pattern.permute.xlu1 %v1443_v38 }
  0xc3   : > { %825 = vperm.xlu1 %1410, %v1651_v36   ;;  %1419 = vset.pattern.permute.xlu0 %v1448_v43 }
  0xc4   : > { %1191 = vperm.xlu0 %1419, %v615_v8  }
  0xc7   : > { %829 = vperm.xlu1 %1410, %v1660_v0  }
  0xc8   : > { %1203 = vperm.xlu0 %1419, %v618_v9  }
  0xcb   : > { %1411 = vset.pattern.permute.xlu1 %v1444_v39 }
  0xcc   : > { %885 = vperm.xlu1 %1411, %v615_v8   ;;  %1421 = vset.pattern.permute.xlu0 %v1439_v10 }
  0xcd   : > { %532 = vperm.xlu0 %1421, %v522_v44  }
  0xd0   : > { %893 = vperm.xlu1 %1411, %v1660_v0  }
  0xd1   : > { %542 = vperm.xlu0 %1421, %v524_v45  }
  0xd4   : > { %897 = vperm.xlu1 %1411, %v618_v9  }
  0xd5   : > { %680 = vperm.xlu0 %1421, %v615_v8  }
  0xd8   : > { %1414 = vset.pattern.permute.xlu1 %v1445_v40 }
  0xd9   : > { %965 = vperm.xlu1 %1414, %v1651_v36   ;;  %692 = vperm.xlu0 %1421, %v618_v9  }
  0xdd   : > { %969 = vperm.xlu1 %1414, %v1660_v0   ;;  %1228 = vperm.xlu0 %1421, %v1222_v46  }
  0xe1   : > { %1415 = vset.pattern.permute.xlu1 %v1446_v41 }
  0xe2   : > { %1038 = vperm.xlu1 %1415, %v615_v8  }
  0xe6   : > { %1046 = vperm.xlu1 %1415, %v1660_v0  }
  0xea   : > { %1050 = vperm.xlu1 %1415, %v618_v9  }
  0xee   : > { %1417 = vset.pattern.permute.xlu1 %v1447_v42 }
  0xef   : > { %1114 = vperm.xlu1 %1417, %v615_v8  }
  0xf3   : > { %1122 = vperm.xlu1 %1417, %v1660_v0  }
  0xf7   : > { %1126 = vperm.xlu1 %1417, %v618_v9  }
  0xfb   : > { %1420 = vset.pattern.permute.xlu1 %v1448_v43 }
  0xfc   : > { %1195 = vperm.xlu1 %1420, %v1651_v36  }
 0x100   : > { %1199 = vperm.xlu1 %1420, %v1660_v0  }
 0x104   : > { %1422 = vset.pattern.permute.xlu1 %v1439_v10 }
 0x105   : > { %1233 = vperm.xlu1 %1422, %v1223_v47  }
 0x118   : > { %v1704_v4 = vpop.permute.xlu0 %626 }
 0x11d   : > { %v1706_v5 = vpop.permute.xlu0 %748 }
 0x11f   : > { %v1716_v14 = vpop.permute.xlu1 %621 }
 0x122   : > { %v1708_v6 = vpop.permute.xlu0 %821 }
 0x123   : > { %v1720_v17 = vpop.permute.xlu1 %631 }
 0x124   : > { %2373 = vst [vmem:[#allocation3_spill] sm:$0xff] %v1720_v17 }
 0x126   : > { %v1710_v11 = vpop.permute.xlu0 %833 }
 0x127   : > { %2372 = vst [vmem:[#allocation2_spill] sm:$0xff] %v1710_v11  ;;  %v1722_v18 = vpop.permute.xlu1 %636 }
 0x128   : > { %2374 = vst [vmem:[#allocation4_spill] sm:$0xff] %v1722_v18 }
 0x12b   : > { %v1714_v13 = vpop.permute.xlu0 %889 }
 0x12c   : > { %v1726_v26 = vpop.permute.xlu1 %684 }
 0x130   : > { %v1732_v37 = vpop.permute.xlu1 %688 }
 0x131   : > { %2376 = vst [vmem:[#allocation6_spill] sm:$0xff] %v1732_v37 }
 0x135   : > { %v1744_v9 = vpop.permute.xlu1 %744 }
 0x139   : > { %v1758_v44 = vpop.permute.xlu1 %752 }
 0x13a   : > { %2377 = vst [vmem:[#allocation7_spill] sm:$0xff] %v1758_v44 }
 0x13d   : > { %v1770_v46 = vpop.permute.xlu1 %756 }
 0x13e   : > { %2379 = vst [vmem:[#allocation9_spill] sm:$0xff] %v1770_v46 }
 0x178   : > { %v502_v49 = vpop.f32.mrb[0].mxu0 }
 0x179   : > { %v503_v50 = vadd.f32 %v502_v49, %v452_v48  ;;  %v504_v51 = vpop.f32.mrb[1].mxu0 }
 0x17a   : > { %v505_v53 = vadd.f32 %v504_v51, %v452_v48  ;;  %v506_v54 = vpop.f32.mrb[2].mxu0  ;;  %v1776_v48 = vpop.permute.xlu1 %825 }
 0x17b   : > { %v507_v55 = vadd.f32 %v506_v54, %v457_v52  ;;  %v508_v56 = vpop.f32.mrb[3].mxu0  ;;  %v511_v58 = vmax.f32 %v503_v50, 0.0 }
 0x17c   : > { %v509_v57 = vadd.f32 %v508_v56, %v457_v52  ;;  %v512_v60 = vmax.f32 %v505_v53, 0.0 }
 0x17d   : > { %v513_v59 = vmax.f32 %v507_v55, 0.0 }
 0x17e   : > { %v514_v61 = vmax.f32 %v509_v57, 0.0  ;;  %v1784_v50 = vpop.permute.xlu1 %829 }
 0x17f   : > { %v519_v62 = vpack.c.bf16 %v513_v59, %v511_v58  ;;  %2380 = vst [vmem:[#allocation10_spill] sm:$0xff] %v1784_v50 }
 0x180   : > { %v520_v63 = vpack.c.bf16 %v514_v61, %v512_v60 }
 0x182   : > { %562 = vmatprep.subr.bf16.mxu1 %v520_v63  ;;  %v1794_v51 = vpop.permute.xlu1 %885 }
 0x183   : > { %563 = vmatpush1.bf16.msra.mxu1 %v519_v62 }
 0x186   : > { %1340 = vmatmul.mubr.msk.bf16.vlgmr.msra.gmra.mrb[0].mxu1 %vm555_vm6, %v1426_v2  ;;  %v1800_v52 = vpop.permute.xlu1 %893 }
 0x187   : > { %604 = vmatprep.mubr.bf16.mxu1 %v1439_v10  ;;  %v1718_v10 = vpop.permute.xlu0 %961  ;;  %2381 = vst [vmem:[#allocation11_spill] sm:$0xff] %v1800_v52 }
 0x18a   : > { %v1812_v54 = vpop.permute.xlu1 %897 }
 0x18b   : > { %v1724_v24 = vpop.permute.xlu0 %973  ;;  %2382 = vst [vmem:[#allocation12_spill] sm:$0xff] %v1812_v54 }
 0x18c   : > { %2375 = vst [vmem:[#allocation5_spill] sm:$0xff] %v1724_v24  ;;  %v800_v24 = vmul.f32 %v343_v16, %v1565_v20 }
 0x18e   : > { %1341 = vmatmul.mubr.msk.bf16.gmra.mrb[4].mxu1 %vm555_vm6, %v1427_v3  ;;  %v1818_v55 = vpop.permute.xlu1 %965  ;;  %v1982_v18 = vrot.slane %v800_v24, %v1572_v23 }
 0x18f   : > { %v1728_v27 = vpop.permute.xlu0 %1042 }
 0x192   : > { %v1824_v56 = vpop.permute.xlu1 %969 }
 0x193   : > { %v1738_v1 = vpop.permute.xlu0 %1118  ;;  %2383 = vst [vmem:[#allocation13_spill] sm:$0xff] %v1824_v56 }
 0x196   : > { %v1834_v57 = vpop.permute.xlu1 %1038 }
 0x197   : > { %v1746_v40 = vpop.permute.xlu0 %1191 }
 0x19a   : > { %v1843_v59 = vpop.permute.xlu1 %1046 }
 0x19b   : > { %v1764_v45 = vpop.permute.xlu0 %1203  ;;  %2385 = vst [vmem:[#allocation15_spill] sm:$0xff] %v1843_v59 }
 0x19c   : > { %2378 = vst [vmem:[#allocation8_spill] sm:$0xff] %v1764_v45 }
 0x19e   : > { %v1853_v60 = vpop.permute.xlu1 %1050 }
 0x19f   : > { %v533_v47 = vpop.permute.xlu0 %532  ;;  %2386 = vst [vmem:[#allocation16_spill] sm:$0xff] %v1853_v60  ;;  %v341_v60 = vsel %vm340_vm7, 0.0, %v2396_v15 }
 0x1a0   : > { %v1017_v54 = vmul.f32 %v341_v60, %v1568_v21  ;;  %v2018_v37 = vrot.slane %v341_v60, %v1572_v23 }
 0x1a2   : > { %v1862_v62 = vpop.permute.xlu1 %1114  ;;  %v1962_v21 = vrot.slane %v1017_v54, %v1576_v25  ;;  %v1965_v20 = vrot.slane %v1017_v54, %v1572_v23 }
 0x1a3   : > { %v543_v2 = vpop.permute.xlu0 %542 }
 0x1a6   : > { %v1872_v63 = vpop.permute.xlu1 %1122 }
 0x1a7   : > { %2388 = vst [vmem:[#allocation18_spill] sm:$0xff] %v1872_v63 }
 0x259   : > { %v596_v31 = vpop.f32.mrb[0].mxu1 }
 0x25a   : > { %v1730_v32 = vadd.f32 %v596_v31, %v528_v7  ;;  %v598_v36 = vpop.f32.mrb[1].mxu1  ;;  %v1893_v31 = vpop.permute.xlu0 %680 }
 0x25b   : > { %v600_v8 = vpop.f32.mrb[2].mxu1  ;;  %v1756_v43 = vadd.f32 %v598_v36, %v528_v7  ;;  %v1881_v7 = vpop.permute.xlu1 %1126 }
 0x25c   : > { %v602_v0 = vpop.f32.mrb[3].mxu1  ;;  %711 = vrot.lane.b32.xlu1 %v1730_v32, %s1436_s15  ;;  %647 = vrot.lane.b32.xlu0 %v1730_v32, %s1437_s16  ;;  %v1778_v49 = vadd.f32 %v600_v8, %v533_v47  ;;  %2390 = vst [vmem:[#allocation20_spill] sm:$0xff] %v1881_v7  ;;  %v1225_v7 = vld [vmem:[%s2344_s8 + $0x18] sm:$0xff]  ;;  %v639_v52 = vmul.f32 %v1716_v14, %v1730_v32 }
 0x25d   : > { %v1806_v53 = vadd.f32 %v602_v0, %v533_v47 }
 0x25e   : > { %v1901_v8 = vpop.permute.xlu0 %692 }
 0x25f   : > { %2393 = vst [vmem:[#allocation23_spill] sm:$0xff] %v1901_v8 }
 0x260   : > { %852 = vrot.lane.b32.xlu1 %v1730_v32, %s1438_s17  ;;  %775 = vrot.lane.b32.xlu0 %v1730_v32, %s1449_s20 }
 0x261   : > { %v606_v38 = vpop.f32.mrb[4].mxu1 }
 0x262   : > { %v608_v39 = vpop.f32.mrb[5].mxu1  ;;  %v1837_v58 = vadd.f32 %v606_v38, %v1712_v12 }
 0x263   : > { %v1748_v41 = vpop.f32.mrb[6].mxu1  ;;  %v1856_v61 = vadd.f32 %v608_v39, %v1712_v12  ;;  %v1891_v12 = vpop.permute.xlu1 %1195 }
 0x264   : > { %992 = vrot.lane.b32.xlu1 %v1730_v32, %s1450_s21  ;;  %916 = vrot.lane.b32.xlu0 %v1730_v32, %s1451_s22  ;;  %v1754_v42 = vpop.f32.mrb[7].mxu1  ;;  %2384 = vst [vmem:[#allocation14_spill] sm:$0xff] %v1837_v58  ;;  %v1875_v3 = vadd.f32 %v1748_v41, %v543_v2  ;;  %2391 = vst [vmem:[#allocation21_spill] sm:$0xff] %v1891_v12  ;;  %v1916_v39 = vpop.permute.xlu0 %1228 }
 0x265   : > { %2387 = vst [vmem:[#allocation17_spill] sm:$0xff] %v1856_v61  ;;  %v1908_v0 = vadd.f32 %v1754_v42, %v543_v2 }
 0x266   : > { %2389 = vst [vmem:[#allocation19_spill] sm:$0xff] %v1875_v3 }
 0x267   : > { %v1899_v36 = vpop.permute.xlu1 %1199  ;;  %2394 = vst [vmem:[#allocation24_spill] sm:$0xff] %v1908_v0 }
 0x268   : > { %719 = vrot.lane.b32.xlu1 %v1756_v43, %s1436_s15  ;;  %1069 = vrot.lane.b32.xlu0 %v1730_v32, %s1452_s23  ;;  %2392 = vst [vmem:[#allocation22_spill] sm:$0xff] %v1899_v36  ;;  %v1224_v36 = vld [vmem:[%s2344_s8 + $0x10] sm:$0xff] }
 0x26b   : > { %v1914_v38 = vpop.permute.xlu1 %1233 }
 0x26c   : > { %860 = vrot.lane.b32.xlu1 %v1756_v43, %s1438_s17  ;;  %1145 = vrot.lane.b32.xlu0 %v1730_v32, %s1453_s24  ;;  %2395 = vst [vmem:[#allocation25_spill] sm:$0xff] %v1914_v38 }
 0x270   : > { %1000 = vrot.lane.b32.xlu1 %v1756_v43, %s1450_s21  ;;  %655 = vrot.lane.b32.xlu0 %v1756_v43, %s1437_s16 }
 0x274   : > { %649 = vrot.lane.b32.xlu1 %v1778_v49, %s1437_s16  ;;  %783 = vrot.lane.b32.xlu0 %v1756_v43, %s1449_s20 }
 0x278   : > { %777 = vrot.lane.b32.xlu1 %v1778_v49, %s1449_s20  ;;  %924 = vrot.lane.b32.xlu0 %v1756_v43, %s1451_s22 }
 0x27c   : > { %918 = vrot.lane.b32.xlu1 %v1778_v49, %s1451_s22  ;;  %1077 = vrot.lane.b32.xlu0 %v1756_v43, %s1452_s23 }
 0x280   : > { %1071 = vrot.lane.b32.xlu1 %v1778_v49, %s1452_s23  ;;  %1153 = vrot.lane.b32.xlu0 %v1756_v43, %s1453_s24 }
 0x284   : > { %1147 = vrot.lane.b32.xlu1 %v1778_v49, %s1453_s24  ;;  %713 = vrot.lane.b32.xlu0 %v1778_v49, %s1436_s15 }
 0x288   : > { %657 = vrot.lane.b32.xlu1 %v1806_v53, %s1437_s16  ;;  %854 = vrot.lane.b32.xlu0 %v1778_v49, %s1438_s17 }
 0x28c   : > { %785 = vrot.lane.b32.xlu1 %v1806_v53, %s1449_s20  ;;  %994 = vrot.lane.b32.xlu0 %v1778_v49, %s1450_s21 }
 0x290   : > { %926 = vrot.lane.b32.xlu1 %v1806_v53, %s1451_s22  ;;  %721 = vrot.lane.b32.xlu0 %v1806_v53, %s1436_s15 }
 0x294   : > { %1079 = vrot.lane.b32.xlu1 %v1806_v53, %s1452_s23  ;;  %862 = vrot.lane.b32.xlu0 %v1806_v53, %s1438_s17 }
 0x298   : > { %1155 = vrot.lane.b32.xlu1 %v1806_v53, %s1453_s24  ;;  %1002 = vrot.lane.b32.xlu0 %v1806_v53, %s1450_s21 }
 0x29c   : > { %715 = vrot.lane.b32.xlu1 %v1837_v58, %s1436_s15  ;;  %651 = vrot.lane.b32.xlu0 %v1837_v58, %s1437_s16 }
 0x2a0   : > { %856 = vrot.lane.b32.xlu1 %v1837_v58, %s1438_s17  ;;  %779 = vrot.lane.b32.xlu0 %v1837_v58, %s1449_s20 }
 0x2a4   : > { %996 = vrot.lane.b32.xlu1 %v1837_v58, %s1450_s21  ;;  %920 = vrot.lane.b32.xlu0 %v1837_v58, %s1451_s22 }
 0x2a8   : > { %723 = vrot.lane.b32.xlu1 %v1856_v61, %s1436_s15  ;;  %1073 = vrot.lane.b32.xlu0 %v1837_v58, %s1452_s23 }
 0x2ac   : > { %864 = vrot.lane.b32.xlu1 %v1856_v61, %s1438_s17  ;;  %1149 = vrot.lane.b32.xlu0 %v1837_v58, %s1453_s24 }
 0x2b0   : > { %1004 = vrot.lane.b32.xlu1 %v1856_v61, %s1450_s21  ;;  %659 = vrot.lane.b32.xlu0 %v1856_v61, %s1437_s16 }
 0x2b4   : > { %653 = vrot.lane.b32.xlu1 %v1875_v3, %s1437_s16  ;;  %787 = vrot.lane.b32.xlu0 %v1856_v61, %s1449_s20 }
 0x2b8   : > { %781 = vrot.lane.b32.xlu1 %v1875_v3, %s1449_s20  ;;  %928 = vrot.lane.b32.xlu0 %v1856_v61, %s1451_s22 }
 0x2bc   : > { %922 = vrot.lane.b32.xlu1 %v1875_v3, %s1451_s22  ;;  %1081 = vrot.lane.b32.xlu0 %v1856_v61, %s1452_s23 }
 0x2c0   : > { %1075 = vrot.lane.b32.xlu1 %v1875_v3, %s1452_s23  ;;  %1157 = vrot.lane.b32.xlu0 %v1856_v61, %s1453_s24 }
 0x2c4   : > { %1151 = vrot.lane.b32.xlu1 %v1875_v3, %s1453_s24  ;;  %717 = vrot.lane.b32.xlu0 %v1875_v3, %s1436_s15 }
 0x2c8   : > { %661 = vrot.lane.b32.xlu1 %v1908_v0, %s1437_s16  ;;  %858 = vrot.lane.b32.xlu0 %v1875_v3, %s1438_s17 }
 0x2cc   : > { %789 = vrot.lane.b32.xlu1 %v1908_v0, %s1449_s20  ;;  %998 = vrot.lane.b32.xlu0 %v1875_v3, %s1450_s21  ;;  %v1988_v3 = vrot.slane %v343_v16, %v1576_v25 }
 0x2ce   : > { %v712_v41 = vpop.permute.xlu1 %711  ;;  %v648_v47 = vpop.permute.xlu0 %647 }
 0x2d0   : > { %930 = vrot.lane.b32.xlu1 %v1908_v0, %s1451_s22  ;;  %725 = vrot.lane.b32.xlu0 %v1908_v0, %s1436_s15 }
 0x2d2   : > { %v853_v42 = vpop.permute.xlu1 %852  ;;  %v776_v2 = vpop.permute.xlu0 %775 }
 0x2d4   : > { %1083 = vrot.lane.b32.xlu1 %v1908_v0, %s1452_s23  ;;  %866 = vrot.lane.b32.xlu0 %v1908_v0, %s1438_s17  ;;  %s1345_s17 = sshll.u32 %s2422_s10, 6 }
 0x2d5   : > { %s2073_s29 = scalar_lea.vmem %s2345_s9, %s1345_s17 }
 0x2d6   : > { %v993_v19 = vpop.permute.xlu1 %992  ;;  %v1930_v45 = vpop.permute.xlu0 %916 }
 0x2d8   : > { %1159 = vrot.lane.b32.xlu1 %v1908_v0, %s1453_s24  ;;  %1006 = vrot.lane.b32.xlu0 %v1908_v0, %s1450_s21 }
 0x2da   : > { %v720_v63 = vpop.permute.xlu1 %719  ;;  %v1944_v59 = vpop.permute.xlu0 %1069 }
 0x2db   : > { %v727_v56 = vsel %vm388_vm3, %v712_v41, %v720_v63  ;;  %v731_v8 = vsel %vm388_vm3, %v720_v63, %v712_v41 }
 0x2dc   : > { %1238 = vperm.xlu1 %1422, %v1224_v36   ;;  %1243 = vperm.xlu0 %1421, %v1225_v7   ;;  %v640_v36 = vmul.f32 %v1716_v14, %v1756_v43  ;;  %v1969_v7 = vrot.slane %v800_v24, %v1576_v25  ;;  %v735_v63 = vmul.f32 %v731_v8, %v1592_v33 }
 0x2dd   : > { %v736_v32 = vmul.f32 %v727_v56, %v1588_v30  ;;  %v1997_v24 = vrot.slane %v341_v60, %v1576_v25 }
 0x2de   : > { %v861_v11 = vpop.permute.xlu1 %860  ;;  %v1950_v46 = vpop.permute.xlu0 %1145 }
 0x2df   : > { %v868_v14 = vsel %vm360_vm4, %v853_v42, %v861_v11  ;;  %v872_v43 = vsel %vm360_vm4, %v861_v11, %v853_v42  ;;  %v1991_v11 = vrot.slane %v343_v16, %v1572_v23 }
 0x2e0   : > { %v876_v42 = vmul.f32 %v872_v43, %v1601_v35  ;;  %v877_v50 = vmul.f32 %v868_v14, %v1597_v34 }
 0x2e2   : > { %v1001_v41 = vpop.permute.xlu1 %1000  ;;  %v656_v15 = vpop.permute.xlu0 %655  ;;  %v901_v58 = vmul.f32 %v1794_v51, %v877_v50 }
 0x2e3   : > { %v663_v54 = vsel %vm416_vm2, %v648_v47, %v656_v15  ;;  %v667_v0 = vsel %vm416_vm2, %v656_v15, %v648_v47  ;;  %v759_v47 = vmul.f32 %v1744_v9, %v735_v63  ;;  %v1009_v43 = vsel %vm1008_vm9, %v993_v19, %v1001_v41 }
 0x2e4   : > { %v671_v56 = vmul.f32 %v667_v0, %v1583_v29  ;;  %v672_v8 = vmul.f32 %v663_v54, %v1580_v28  ;;  %v760_v0 = vmul.f32 %v1744_v9, %v736_v32  ;;  %v1013_v14 = vsel %vm1008_vm9, %v1001_v41, %v993_v19 }
 0x2e5   : > { %v1170_v19 = vmul.f32 %v343_v16, %v341_v60 }
 0x2e6   : > { %v695_v15 = vmul.f32 %v1893_v31, %v671_v56  ;;  %v696_v54 = vmul.f32 %v1893_v31, %v672_v8  ;;  %v2003_v44 = vpop.permute.xlu1 %649  ;;  %v784_v61 = vpop.permute.xlu0 %783  ;;  %v900_v8 = vmul.f32 %v1794_v51, %v876_v42 }
 0x2e7   : > { %v792_v17 = vsel %vm791_vm10, %v776_v2, %v784_v61  ;;  %v796_v63 = vsel %vm791_vm10, %v784_v61, %v776_v2 }
 0x2e8   : > { %v703_v9 = vadd.f32 %v695_v15, %v639_v52  ;;  %v704_v32 = vadd.f32 %v696_v54, %v640_v36  ;;  %v812_v56 = vmul.f32 %v1969_v7, %v796_v63  ;;  %v813_v31 = vmul.f32 %v1982_v18, %v792_v17 }
 0x2e9   : > { %v1029_v36 = vmul.f32 %v1962_v21, %v1009_v43  ;;  %v1030_v17 = vmul.f32 %v1965_v20, %v1013_v14 }
 0x2ea   : > { %v768_v41 = vadd.f32 %v760_v0, %v704_v32  ;;  %v767_v38 = vadd.f32 %v759_v47, %v703_v9  ;;  %v836_v12 = vmul.f32 %v1708_v6, %v812_v56  ;;  %v837_v61 = vmul.f32 %v1708_v6, %v813_v31  ;;  %v2022_v52 = vpop.permute.xlu1 %777  ;;  %v925_v2 = vpop.permute.xlu0 %924 }
 0x2eb   : > { %v933_v50 = vsel %vm932_vm11, %v1930_v45, %v925_v2  ;;  %v937_v51 = vsel %vm932_vm11, %v925_v2, %v1930_v45  ;;  %v2036_v47 = vrot.slane %v1170_v19, %v1576_v25  ;;  %v2039_v0 = vrot.slane %v1170_v19, %v1572_v23 }
 0x2ec   : > { %v844_v60 = vadd.f32 %v836_v12, %v767_v38  ;;  %v845_v16 = vadd.f32 %v837_v61, %v768_v41  ;;  %v952_v42 = vmul.f32 %v1988_v3, %v933_v50  ;;  %v953_v6 = vmul.f32 %v1991_v11, %v937_v51 }
 0x2ed   : > { %v1053_v14 = vmul.f32 %v1834_v57, %v1029_v36  ;;  %v1054_v63 = vmul.f32 %v1834_v57, %v1030_v17 }
 0x2ee   : > { %v909_v15 = vadd.f32 %v901_v58, %v845_v16  ;;  %v908_v54 = vadd.f32 %v900_v8, %v844_v60  ;;  %v976_v43 = vmul.f32 %v1718_v10, %v952_v42  ;;  %v977_v45 = vmul.f32 %v1718_v10, %v953_v6  ;;  %v919_v12 = vpop.permute.xlu1 %918  ;;  %v1078_v38 = vpop.permute.xlu0 %1077 }
 0x2ef   : > { %v1086_v25 = vsel %vm1085_vm12, %v1944_v59, %v1078_v38  ;;  %v1090_v23 = vsel %vm1085_vm12, %v1078_v38, %v1944_v59 }
 0x2f0   : > { %v984_v58 = vadd.f32 %v976_v43, %v908_v54  ;;  %v985_v9 = vadd.f32 %v977_v45, %v909_v15  ;;  %v1105_v32 = vmul.f32 %v1997_v24, %v1086_v25  ;;  %v1106_v10 = vmul.f32 %v2018_v37, %v1090_v23 }
 0x2f2   : > { %v1062_v56 = vadd.f32 %v1054_v63, %v985_v9  ;;  %v1061_v31 = vadd.f32 %v1053_v14, %v984_v58  ;;  %v1129_v8 = vmul.f32 %v1862_v62, %v1105_v32  ;;  %v1130_v57 = vmul.f32 %v1862_v62, %v1106_v10  ;;  %v1072_v19 = vpop.permute.xlu1 %1071  ;;  %v1154_v41 = vpop.permute.xlu0 %1153 }
 0x2f3   : > { %v1162_v61 = vsel %vm1161_vm13, %v1950_v46, %v1154_v41  ;;  %v1166_v59 = vsel %vm1161_vm13, %v1154_v41, %v1950_v46  ;;  %v641_v10 = vmul.f32 %v1704_v4, %v1778_v49 }
 0x2f4   : > { %v1182_v2 = vmul.f32 %v2036_v47, %v1162_v61  ;;  %v1183_v36 = vmul.f32 %v2039_v0, %v1166_v59  ;;  %v1137_v17 = vadd.f32 %v1129_v8, %v1061_v31  ;;  %v1138_v50 = vadd.f32 %v1130_v57, %v1062_v56 }
 0x2f5   : > { %v642_v56 = vmul.f32 %v1704_v4, %v1806_v53 }
 0x2f6   : > { %v1206_v51 = vmul.f32 %v1746_v40, %v1182_v2  ;;  %v1207_v62 = vmul.f32 %v1746_v40, %v1183_v36  ;;  %v2065_v60 = vpop.permute.xlu1 %1147  ;;  %v714_v16 = vpop.permute.xlu0 %713 }
 0x2f8   : > { %v1214_v42 = vadd.f32 %v1206_v51, %v1137_v17  ;;  %v1215_v6 = vadd.f32 %v1207_v62, %v1138_v50 }
 0x2fa   : > { %v1246_v15 = vadd.f32 %v1916_v39, %v1214_v42  ;;  %v1247_v46 = vadd.f32 %v1916_v39, %v1215_v6  ;;  %v658_v54 = vpop.permute.xlu1 %657  ;;  %v855_v43 = vpop.permute.xlu0 %854 }
 0x2fb   : > { %v664_v40 = vsel %vm416_vm2, %v2003_v44, %v658_v54  ;;  %v668_v45 = vsel %vm416_vm2, %v658_v54, %v2003_v44 }
 0x2fc   : > { %v1254_v38 = vmax.f32 %v1246_v15, 0.0  ;;  %v1255_v14 = vmax.f32 %v1247_v46, 0.0  ;;  %v673_v39 = vmul.f32 %v668_v45, %v1583_v29  ;;  %v674_v63 = vmul.f32 %v664_v40, %v1580_v28 }
 0x2fe   : > { %1262 = vst [vmem:[%s2073_s29] sm:$0xff] %v1254_v38  ;;  %1263 = vst [vmem:[%s2073_s29 + $0x8] sm:$0xff] %v1255_v14  ;;  %v786_v25 = vpop.permute.xlu1 %785  ;;  %v995_v23 = vpop.permute.xlu0 %994  ;;  %v697_v58 = vmul.f32 %v1726_v26, %v673_v39  ;;  %v698_v9 = vmul.f32 %v1726_v26, %v674_v63 }
 0x2ff   : > { %v793_v32 = vsel %vm791_vm10, %v2022_v52, %v786_v25  ;;  %v797_v44 = vsel %vm791_vm10, %v786_v25, %v2022_v52 }
 0x300   : > { %v814_v61 = vmul.f32 %v1969_v7, %v797_v44  ;;  %v815_v49 = vmul.f32 %v1982_v18, %v793_v32  ;;  %v705_v59 = vadd.f32 %v697_v58, %v641_v10  ;;  %v706_v2 = vadd.f32 %v698_v9, %v642_v56 }
 0x302   : > { %v927_v31 = vpop.permute.xlu1 %926  ;;  %v722_v8 = vpop.permute.xlu0 %721  ;;  %v838_v6 = vmul.f32 %v1776_v48, %v814_v61  ;;  %v839_v15 = vmul.f32 %v1776_v48, %v815_v49 }
 0x303   : > { %v934_v57 = vsel %vm932_vm11, %v919_v12, %v927_v31  ;;  %v938_v26 = vsel %vm932_vm11, %v927_v31, %v919_v12  ;;  %v728_v41 = vsel %vm388_vm3, %v714_v16, %v722_v8  ;;  %v732_v52 = vsel %vm388_vm3, %v722_v8, %v714_v16 }
 0x304   : > { %v737_v4 = vmul.f32 %v732_v52, %v1592_v33  ;;  %v738_v53 = vmul.f32 %v728_v41, %v1588_v30  ;;  %v954_v36 = vmul.f32 %v1988_v3, %v934_v57  ;;  %v955_v12 = vmul.f32 %v1991_v11, %v938_v26 }
 0x306   : > { %v761_v17 = vmul.f32 %v1706_v5, %v737_v4  ;;  %v762_v50 = vmul.f32 %v1706_v5, %v738_v53  ;;  %v1080_v51 = vpop.permute.xlu1 %1079  ;;  %v863_v62 = vpop.permute.xlu0 %862  ;;  %v978_v14 = vmul.f32 %v1818_v55, %v954_v36 }
 0x307   : > { %v869_v16 = vsel %vm360_vm4, %v855_v43, %v863_v62  ;;  %v873_v42 = vsel %vm360_vm4, %v863_v62, %v855_v43  ;;  %v1087_v40 = vsel %vm1085_vm12, %v1072_v19, %v1080_v51  ;;  %v1091_v5 = vsel %vm1085_vm12, %v1080_v51, %v1072_v19 }
 0x308   : > { %v769_v46 = vadd.f32 %v761_v17, %v705_v59  ;;  %v770_v54 = vadd.f32 %v762_v50, %v706_v2  ;;  %v878_v45 = vmul.f32 %v873_v42, %v1601_v35  ;;  %v879_v38 = vmul.f32 %v869_v16, %v1597_v34  ;;  %v2397_v50 = vld [vmem:[#allocation21_spill] sm:$0xff] }
 0x309   : > { %v979_v43 = vmul.f32 %v1818_v55, %v955_v12  ;;  %v1107_v44 = vmul.f32 %v1997_v24, %v1087_v40  ;;  %v1108_v55 = vmul.f32 %v2018_v37, %v1091_v5 }
 0x30a   : > { %v846_v39 = vadd.f32 %v838_v6, %v769_v46  ;;  %v847_v63 = vadd.f32 %v839_v15, %v770_v54  ;;  %v1156_v25 = vpop.permute.xlu1 %1155  ;;  %v1003_v48 = vpop.permute.xlu0 %1002  ;;  %v902_v58 = vmul.f32 %v1714_v13, %v878_v45  ;;  %v903_v9 = vmul.f32 %v1714_v13, %v879_v38  ;;  %v2398_v54 = vld [vmem:[#allocation25_spill] sm:$0xff] }
 0x30b   : > { %v1163_v19 = vsel %vm1161_vm13, %v2065_v60, %v1156_v25  ;;  %v1167_v32 = vsel %vm1161_vm13, %v1156_v25, %v2065_v60  ;;  %v1010_v10 = vsel %vm1008_vm9, %v995_v23, %v1003_v48  ;;  %v1014_v56 = vsel %vm1008_vm9, %v1003_v48, %v995_v23 }
 0x30c   : > { %v910_v31 = vadd.f32 %v902_v58, %v846_v39  ;;  %v911_v13 = vadd.f32 %v903_v9, %v847_v63  ;;  %v1031_v8 = vmul.f32 %v1962_v21, %v1010_v10  ;;  %v1032_v57 = vmul.f32 %v1965_v20, %v1014_v56 }
 0x30d   : > { %v1184_v26 = vmul.f32 %v2036_v47, %v1163_v19  ;;  %v1185_v60 = vmul.f32 %v2039_v0, %v1167_v32  ;;  %v1131_v23 = vmul.f32 %v1738_v1, %v1107_v44  ;;  %v1132_v59 = vmul.f32 %v1738_v1, %v1108_v55 }
 0x30e   : > { %v716_v41 = vpop.permute.xlu1 %715  ;;  %v652_v52 = vpop.permute.xlu0 %651  ;;  %v986_v61 = vadd.f32 %v978_v14, %v910_v31  ;;  %v987_v49 = vadd.f32 %v979_v43, %v911_v13  ;;  %v1055_v4 = vmul.f32 %v1728_v27, %v1031_v8  ;;  %v1056_v53 = vmul.f32 %v1728_v27, %v1032_v57 }
 0x30f   : > { %v1208_v51 = vmul.f32 %v2397_v50, %v1184_v26  ;;  %v1209_v62 = vmul.f32 %v2397_v50, %v1185_v60  ;;  %v2399_v60 = vld [vmem:[#allocation6_spill] sm:$0xff]  ;;  %v2402_v50 = vld [vmem:[#allocation17_spill] sm:$0xff] }
 0x310   : > { %v1063_v2 = vadd.f32 %v1055_v4, %v986_v61  ;;  %v1064_v36 = vadd.f32 %v1056_v53, %v987_v49 }
 0x312   : > { %v857_v12 = vpop.permute.xlu1 %856  ;;  %v780_v17 = vpop.permute.xlu0 %779  ;;  %v1139_v16 = vadd.f32 %v1131_v23, %v1063_v2  ;;  %v1140_v42 = vadd.f32 %v1132_v59, %v1064_v36  ;;  %v2400_v59 = vld [vmem:[#allocation14_spill] sm:$0xff]  ;;  %v2401_v2 = vld [vmem:[#allocation3_spill] sm:$0xff] }
 0x313   : > { %v643_v36 = vmul.f32 %v2401_v2, %v2400_v59  ;;  %v2406_v59 = vld [vmem:[#allocation4_spill] sm:$0xff] }
 0x314   : > { %v1216_v6 = vadd.f32 %v1208_v51, %v1139_v16  ;;  %v1217_v15 = vadd.f32 %v1209_v62, %v1140_v42  ;;  %v644_v51 = vmul.f32 %v2401_v2, %v2402_v50 }
 0x316   : > { %v2151_v46 = vpop.permute.xlu1 %996  ;;  %v921_v27 = vpop.permute.xlu0 %920  ;;  %v1248_v40 = vadd.f32 %v2398_v54, %v1216_v6  ;;  %v1249_v1 = vadd.f32 %v2398_v54, %v1217_v15 }
 0x318   : > { %v1256_v5 = vmax.f32 %v1248_v40, 0.0  ;;  %v1257_v45 = vmax.f32 %v1249_v1, 0.0 }
 0x31a   : > { %v724_v38 = vpop.permute.xlu1 %723  ;;  %v2155_v14 = vpop.permute.xlu0 %1073  ;;  %1264 = vst [vmem:[%s2073_s29 + $0x10] sm:$0xff] %v1256_v5  ;;  %1265 = vst [vmem:[%s2073_s29 + $0x18] sm:$0xff] %v1257_v45  ;;  %v2403_v5 = vld [vmem:[#allocation7_spill] sm:$0xff] }
 0x31b   : > { %v729_v57 = vsel %vm388_vm3, %v716_v41, %v724_v38  ;;  %v733_v26 = vsel %vm388_vm3, %v724_v38, %v716_v41 }
 0x31c   : > { %v739_v41 = vmul.f32 %v733_v26, %v1592_v33  ;;  %v740_v62 = vmul.f32 %v729_v57, %v1588_v30 }
 0x31e   : > { %v865_v43 = vpop.permute.xlu1 %864  ;;  %v2159_v39 = vpop.permute.xlu0 %1149  ;;  %v763_v45 = vmul.f32 %v2403_v5, %v739_v41  ;;  %v764_v38 = vmul.f32 %v2403_v5, %v740_v62 }
 0x31f   : > { %v870_v16 = vsel %vm360_vm4, %v857_v12, %v865_v43  ;;  %v874_v42 = vsel %vm360_vm4, %v865_v43, %v857_v12 }
 0x320   : > { %v880_v12 = vmul.f32 %v874_v42, %v1601_v35  ;;  %v881_v43 = vmul.f32 %v870_v16, %v1597_v34 }
 0x322   : > { %v1005_v63 = vpop.permute.xlu1 %1004  ;;  %v660_v25 = vpop.permute.xlu0 %659 }
 0x323   : > { %v665_v32 = vsel %vm416_vm2, %v652_v52, %v660_v25  ;;  %v669_v44 = vsel %vm416_vm2, %v660_v25, %v652_v52 }
 0x324   : > { %v675_v56 = vmul.f32 %v669_v44, %v1583_v29  ;;  %v676_v31 = vmul.f32 %v665_v32, %v1580_v28 }
 0x326   : > { %v654_v48 = vpop.permute.xlu1 %653  ;;  %v788_v58 = vpop.permute.xlu0 %787  ;;  %v699_v52 = vmul.f32 %v2399_v60, %v675_v56  ;;  %v700_v61 = vmul.f32 %v2399_v60, %v676_v31  ;;  %v2404_v56 = vld [vmem:[#allocation10_spill] sm:$0xff] }
 0x327   : > { %v794_v49 = vsel %vm791_vm10, %v780_v17, %v788_v58  ;;  %v798_v4 = vsel %vm791_vm10, %v788_v58, %v780_v17 }
 0x328   : > { %v707_v17 = vadd.f32 %v699_v52, %v643_v36  ;;  %v708_v6 = vadd.f32 %v700_v61, %v644_v51  ;;  %v816_v15 = vmul.f32 %v1969_v7, %v798_v4  ;;  %v817_v54 = vmul.f32 %v1982_v18, %v794_v49  ;;  %v2405_v4 = vld [vmem:[#allocation19_spill] sm:$0xff]  ;;  %v2407_v36 = vld [vmem:[#allocation24_spill] sm:$0xff] }
 0x329   : > { %v645_v2 = vmul.f32 %v2406_v59, %v2405_v4  ;;  %v646_v50 = vmul.f32 %v2406_v59, %v2407_v36  ;;  %v1011_v51 = vsel %vm1008_vm9, %v2151_v46, %v1005_v63  ;;  %v2412_v59 = vld [vmem:[#allocation2_spill] sm:$0xff] }
 0x32a   : > { %v782_v9 = vpop.permute.xlu1 %781  ;;  %v929_v19 = vpop.permute.xlu0 %928  ;;  %v771_v32 = vadd.f32 %v763_v45, %v707_v17  ;;  %v772_v44 = vadd.f32 %v764_v38, %v708_v6  ;;  %v840_v31 = vmul.f32 %v2404_v56, %v816_v15  ;;  %v841_v57 = vmul.f32 %v2404_v56, %v817_v54  ;;  %v2410_v56 = vld [vmem:[#allocation13_spill] sm:$0xff] }
 0x32b   : > { %v935_v26 = vsel %vm932_vm11, %v921_v27, %v929_v19  ;;  %v939_v60 = vsel %vm932_vm11, %v929_v19, %v921_v27  ;;  %v1015_v27 = vsel %vm1008_vm9, %v1005_v63, %v2151_v46  ;;  %v2408_v19 = vld [vmem:[#allocation11_spill] sm:$0xff]  ;;  %v2234_v15 = vmul.f32 %v1962_v21, %v1011_v51 }
 0x32c   : > { %v848_v16 = vadd.f32 %v840_v31, %v771_v32  ;;  %v849_v42 = vadd.f32 %v841_v57, %v772_v44  ;;  %v956_v17 = vmul.f32 %v1988_v3, %v935_v26  ;;  %v957_v6 = vmul.f32 %v1991_v11, %v939_v60  ;;  %v2409_v63 = vld [vmem:[#allocation23_spill] sm:$0xff]  ;;  %v2411_v60 = vld [vmem:[#allocation9_spill] sm:$0xff] }
 0x32d   : > { %v2237_v46 = vmul.f32 %v1965_v20, %v1015_v27 }
 0x32e   : > { %v2165_v55 = vpop.permute.xlu1 %922  ;;  %v2167_v10 = vpop.permute.xlu0 %1081  ;;  %v980_v31 = vmul.f32 %v2410_v56, %v956_v17  ;;  %v981_v57 = vmul.f32 %v2410_v56, %v957_v6  ;;  %v2416_v56 = vld [vmem:[#allocation15_spill] sm:$0xff] }
 0x332   : > { %v2171_v13 = vpop.permute.xlu1 %1075  ;;  %v2173_v8 = vpop.permute.xlu0 %1157 }
 0x336   : > { %v2185_v53 = vpop.permute.xlu1 %1151  ;;  %v718_v23 = vpop.permute.xlu0 %717 }
 0x33a   : > { %v662_v40 = vpop.permute.xlu1 %661  ;;  %v859_v1 = vpop.permute.xlu0 %858 }
 0x33b   : > { %v666_v25 = vsel %vm416_vm2, %v654_v48, %v662_v40  ;;  %v670_v58 = vsel %vm416_vm2, %v662_v40, %v654_v48 }
 0x33c   : > { %v677_v52 = vmul.f32 %v670_v58, %v1583_v29  ;;  %v678_v48 = vmul.f32 %v666_v25, %v1580_v28  ;;  %v904_v29 = vmul.f32 %v2408_v19, %v880_v12  ;;  %v905_v28 = vmul.f32 %v2408_v19, %v881_v43 }
 0x33e   : > { %v790_v61 = vpop.permute.xlu1 %789  ;;  %v999_v49 = vpop.permute.xlu0 %998  ;;  %v701_v54 = vmul.f32 %v2409_v63, %v677_v52  ;;  %v702_v40 = vmul.f32 %v2409_v63, %v678_v48  ;;  %v912_v44 = vadd.f32 %v904_v29, %v848_v16  ;;  %v2414_v63 = vld [vmem:[#allocation12_spill] sm:$0xff] }
 0x33f   : > { %v795_v41 = vsel %vm791_vm10, %v782_v9, %v790_v61  ;;  %v799_v62 = vsel %vm791_vm10, %v790_v61, %v782_v9 }
 0x340   : > { %v818_v9 = vmul.f32 %v1969_v7, %v799_v62  ;;  %v819_v38 = vmul.f32 %v1982_v18, %v795_v41  ;;  %v913_v18 = vadd.f32 %v905_v28, %v849_v42  ;;  %v709_v26 = vadd.f32 %v701_v54, %v645_v2  ;;  %v2413_v42 = vld [vmem:[#allocation5_spill] sm:$0xff] }
 0x341   : > { %v988_v29 = vadd.f32 %v980_v31, %v912_v44  ;;  %v1057_v31 = vmul.f32 %v2416_v56, %v2234_v15 }
 0x342   : > { %v931_v5 = vpop.permute.xlu1 %930  ;;  %v726_v45 = vpop.permute.xlu0 %725  ;;  %v842_v36 = vmul.f32 %v2412_v59, %v818_v9  ;;  %v843_v2 = vmul.f32 %v2412_v59, %v819_v38  ;;  %v989_v28 = vadd.f32 %v981_v57, %v913_v18  ;;  %v1058_v57 = vmul.f32 %v2416_v56, %v2237_v46 }
 0x343   : > { %v730_v25 = vsel %vm388_vm3, %v718_v23, %v726_v45  ;;  %v734_v58 = vsel %vm388_vm3, %v726_v45, %v718_v23  ;;  %v936_v12 = vsel %vm932_vm11, %v2165_v55, %v931_v5  ;;  %v940_v43 = vsel %vm932_vm11, %v931_v5, %v2165_v55 }
 0x344   : > { %v741_v32 = vmul.f32 %v734_v58, %v1592_v33  ;;  %v742_v7 = vmul.f32 %v730_v25, %v1588_v30  ;;  %v710_v23 = vadd.f32 %v702_v40, %v646_v50  ;;  %v958_v4 = vmul.f32 %v1988_v3, %v936_v12 }
 0x345   : > { %v959_v55 = vmul.f32 %v1991_v11, %v940_v43  ;;  %v1088_v3 = vsel %vm1085_vm12, %v2155_v14, %v2167_v10  ;;  %v1092_v11 = vsel %vm1085_vm12, %v2167_v10, %v2155_v14  ;;  %v2415_v43 = vld [vmem:[#allocation16_spill] sm:$0xff]  ;;  %v1066_v46 = vadd.f32 %v1058_v57, %v989_v28 }
 0x346   : > { %v765_v52 = vmul.f32 %v2411_v60, %v741_v32  ;;  %v766_v48 = vmul.f32 %v2411_v60, %v742_v7  ;;  %v867_v61 = vpop.permute.xlu0 %866  ;;  %v1084_v27 = vpop.permute.xlu1 %1083  ;;  %v982_v17 = vmul.f32 %v2413_v42, %v958_v4  ;;  %v1109_v25 = vmul.f32 %v1997_v24, %v1088_v3  ;;  %v2417_v60 = vld [vmem:[#allocation18_spill] sm:$0xff] }
 0x347   : > { %v871_v30 = vsel %vm360_vm4, %v859_v1, %v867_v61  ;;  %v875_v33 = vsel %vm360_vm4, %v867_v61, %v859_v1  ;;  %v983_v6 = vmul.f32 %v2413_v42, %v959_v55  ;;  %v1089_v14 = vsel %vm1085_vm12, %v2171_v13, %v1084_v27  ;;  %v2418_v61 = vld [vmem:[#allocation20_spill] sm:$0xff] }
 0x348   : > { %v773_v50 = vadd.f32 %v765_v52, %v709_v26  ;;  %v774_v51 = vadd.f32 %v766_v48, %v710_v23  ;;  %v882_v19 = vmul.f32 %v875_v33, %v1601_v35  ;;  %v883_v1 = vmul.f32 %v871_v30, %v1597_v34 }
 0x349   : > { %v1093_v34 = vsel %vm1085_vm12, %v1084_v27, %v2171_v13  ;;  %v1110_v58 = vmul.f32 %v2018_v37, %v1092_v11  ;;  %v1164_v13 = vsel %vm1161_vm13, %v2159_v39, %v2173_v8  ;;  %v1111_v44 = vmul.f32 %v1997_v24, %v1089_v14  ;;  %v2420_v27 = vld [vmem:[#allocation8_spill] sm:$0xff] }
 0x34a   : > { %v850_v41 = vadd.f32 %v842_v36, %v773_v50  ;;  %v851_v62 = vadd.f32 %v843_v2, %v774_v51  ;;  %v1007_v16 = vpop.permute.xlu0 %1006  ;;  %v906_v54 = vmul.f32 %v2414_v63, %v882_v19  ;;  %v907_v40 = vmul.f32 %v2414_v63, %v883_v1  ;;  %v1160_v12 = vpop.permute.xlu1 %1159 }
 0x34b   : > { %v1012_v35 = vsel %vm1008_vm9, %v999_v49, %v1007_v16  ;;  %v1016_v10 = vsel %vm1008_vm9, %v1007_v16, %v999_v49  ;;  %v1168_v49 = vsel %vm1161_vm13, %v2173_v8, %v2159_v39  ;;  %v1112_v18 = vmul.f32 %v2018_v37, %v1093_v34 }
 0x34c   : > { %v914_v5 = vadd.f32 %v906_v54, %v850_v41  ;;  %v915_v45 = vadd.f32 %v907_v40, %v851_v62  ;;  %v1035_v9 = vmul.f32 %v1962_v21, %v1012_v35  ;;  %v1036_v38 = vmul.f32 %v1965_v20, %v1016_v10 }
 0x34d   : > { %v1165_v39 = vsel %vm1161_vm13, %v2185_v53, %v1160_v12  ;;  %v1169_v8 = vsel %vm1161_vm13, %v1160_v12, %v2185_v53  ;;  %v1186_v26 = vmul.f32 %v2036_v47, %v1164_v13  ;;  %v1187_v24 = vmul.f32 %v2039_v0, %v1168_v49  ;;  %v2419_v53 = vld [vmem:[#allocation22_spill] sm:$0xff] }
 0x34e   : > { %v1059_v32 = vmul.f32 %v2415_v43, %v1035_v9  ;;  %v1060_v21 = vmul.f32 %v2415_v43, %v1036_v38  ;;  %v990_v20 = vadd.f32 %v982_v17, %v914_v5  ;;  %v991_v7 = vadd.f32 %v983_v6, %v915_v45 }
 0x34f   : > { %v1133_v52 = vmul.f32 %v2417_v60, %v1109_v25  ;;  %v1134_v15 = vmul.f32 %v2417_v60, %v1110_v58  ;;  %v1065_v48 = vadd.f32 %v1057_v31, %v988_v29  ;;  %v1135_v4 = vmul.f32 %v2418_v61, %v1111_v44 }
 0x350   : > { %v1067_v23 = vadd.f32 %v1059_v32, %v990_v20  ;;  %v1068_v37 = vadd.f32 %v1060_v21, %v991_v7  ;;  %v1136_v55 = vmul.f32 %v2418_v61, %v1112_v18  ;;  %v1188_v30 = vmul.f32 %v2036_v47, %v1165_v39 }
 0x351   : > { %v1189_v22 = vmul.f32 %v2039_v0, %v1169_v8  ;;  %v1210_v33 = vmul.f32 %v2419_v53, %v1186_v26  ;;  %v1211_v59 = vmul.f32 %v2419_v53, %v1187_v24  ;;  %v1141_v50 = vadd.f32 %v1133_v52, %v1065_v48 }
 0x352   : > { %v1143_v36 = vadd.f32 %v1135_v4, %v1067_v23  ;;  %v1144_v2 = vadd.f32 %v1136_v55, %v1068_v37  ;;  %v1142_v51 = vadd.f32 %v1134_v15, %v1066_v46  ;;  %v1212_v3 = vmul.f32 %v2420_v27, %v1188_v30 }
 0x353   : > { %v1213_v11 = vmul.f32 %v2420_v27, %v1189_v22  ;;  %v1218_v19 = vadd.f32 %v1210_v33, %v1141_v50 }
 0x354   : > { %v1219_v1 = vadd.f32 %v1211_v59, %v1142_v51  ;;  %v1220_v47 = vadd.f32 %v1212_v3, %v1143_v36 }
 0x355   : > { %v1221_v0 = vadd.f32 %v1213_v11, %v1144_v2 }
 0x35b   : > { %v1239_v29 = vpop.permute.xlu1 %1238  ;;  %v1244_v28 = vpop.permute.xlu0 %1243 }
 0x35c   : > { %v1250_v41 = vadd.f32 %v1239_v29, %v1218_v19  ;;  %v1251_v62 = vadd.f32 %v1239_v29, %v1219_v1  ;;  %v1252_v16 = vadd.f32 %v1244_v28, %v1220_v47  ;;  %v1253_v42 = vadd.f32 %v1244_v28, %v1221_v0 }
 0x35e   : > { %v1258_v17 = vmax.f32 %v1250_v41, 0.0  ;;  %v1259_v6 = vmax.f32 %v1251_v62, 0.0  ;;  %v1260_v63 = vmax.f32 %v1252_v16, 0.0  ;;  %v1261_v54 = vmax.f32 %v1253_v42, 0.0 }
 0x360   : > { %1266 = vst [vmem:[%s2073_s29 + $0x20] sm:$0xff] %v1258_v17  ;;  %1267 = vst [vmem:[%s2073_s29 + $0x28] sm:$0xff] %v1259_v6 }
 0x361   : > { %1268 = vst [vmem:[%s2073_s29 + $0x30] sm:$0xff] %v1260_v63  ;;  %1269 = vst [vmem:[%s2073_s29 + $0x38] sm:$0xff] %v1261_v54 }
 0x362 PF: > { %s19_s30 = sadd.s32 1, %s1434_s30  }
 0x363   : > { %p16_p4 = scmp.ge.s32.totalorder %s19_s30, 4  }
 0x365   :  { %18 = sbr.rel (!%p16_p4) target bundleno = 1 (0x1), region = 86 }

</bundles_post_ra>
